<compile_context>
chip_gen: v6e
topology: v6e:2x2x1
jax: 0.10.0
libtpu: 0.0.40
codegen_flags: <defaults>
</compile_context>

<pallas_src>
import functools

import jax
import jax.numpy as jnp
from jax import lax
from jax.experimental import pallas as pl
from jax.experimental.pallas import tpu as pltpu


def _round_up(x, m):
    return (x + m - 1) // m * m


# --------------------------- fused forward kernel ---------------------------
def _fused_kernel(x4q_ref, w1_ref, b1_ref, w2r_ref, b2_ref, wf2_ref, bf_ref,
                  o_ref, p1f_ref, *,
                  B, Cin, C1, C2, KH, KW, Wp1, H2, Hf, Wf, RB, MROWS, MOUT):
    # ---- conv1 (1x1) + ReLU + 2x2/2 max-pool, vectorized over ALL rows.
    # x4q holds the 4 pooling quadrants (even/odd H x even/odd W) with the
    # spatial index flattened into sublanes and the batch stacked at stride RB:
    #     p1f[b*RB + h*Wp1 + w, :] = pool1_b[h, w, :]
    w1 = w1_ref[...]                                     # (Cin, C1)
    pool1 = None
    for q in range(4):
        xq = x4q_ref[q]                                  # (P1_ROWS, Cin)
        c = xq[:, 0:1] * w1[0:1, :]                      # (P1_ROWS, C1)
        for ci in range(1, Cin):
            c = c + xq[:, ci:ci + 1] * w1[ci:ci + 1, :]
        pool1 = c if pool1 is None else jnp.maximum(pool1, c)
    # bias after the max (per-channel constant) and ReLU after pool (monotone).
    p1f_ref[...] = jnp.maximum(pool1 + b1_ref[...], 0.0)  # one aligned store

    # ---- conv2 (5x5, valid) + ReLU: KH matmuls with the KW taps folded into
    # the N (lane) dimension.  LHS slice starts kh*Wp1 are sublane-aligned and
    # both batch elements ride in the M dimension.
    rsum = jnp.dot(p1f_ref[pl.ds(0, MROWS), :], w2r_ref[0],
                   preferred_element_type=jnp.float32)   # (MROWS, KW*C2)
    for kh in range(1, KH):
        rsum = rsum + jnp.dot(p1f_ref[pl.ds(kh * Wp1, MROWS), :], w2r_ref[kh],
                              preferred_element_type=jnp.float32)
    # Recombine the KW column blocks with kw-row-shifted adds (VPU/XLU only):
    #   y2[m, :] = sum_kw rsum[m + kw, kw*C2:(kw+1)*C2]
    y2 = rsum[0:MOUT, 0:C2]
    for kw in range(1, KW):
        y2 = y2 + rsum[kw:kw + MOUT, kw * C2:(kw + 1) * C2]
    y2 = jnp.maximum(y2 + b2_ref[...], 0.0)              # (MOUT, C2), in vregs
    # Rows with flattened column >= W2 (and the pad rows) hold garbage but are
    # never read below.

    # ---- 2x2/2 max-pool + NCHW flatten + fc1 + softmax, all on vreg values.
    # wf2 is pre-permuted so the lane-concatenated pooled pieces reproduce
    # nn.Flatten()'s NCHW ordering: wf2[s*C2 + c, n] == wf[c*S + s, n].
    wf2 = wf2_ref[...]                                   # (S*C2, N)
    bf = bf_ref[...]                                     # (1, N)
    for b in range(B):
        slab = y2[b * RB:b * RB + H2 * Wp1, :]           # (H2*Wp1, C2)
        pieces = []
        for a in range(Hf):                              # H-pool: row-pair max
            h = jnp.maximum(slab[2 * a * Wp1:(2 * a + 1) * Wp1, :],
                            slab[(2 * a + 1) * Wp1:(2 * a + 2) * Wp1, :])
            for w in range(Wf):                          # W-pool
                pieces.append(jnp.maximum(h[2 * w:2 * w + 1, :],
                                          h[2 * w + 1:2 * w + 2, :]))
        feat = jnp.concatenate(pieces, axis=1)           # (1, S*C2)
        logits = jnp.dot(feat, wf2,
                         preferred_element_type=jnp.float32) + bf
        z = logits - jnp.max(logits, axis=-1, keepdims=True)
        e = jnp.exp(z)
        o_ref[pl.ds(b, 1), :] = e / jnp.sum(e, axis=-1, keepdims=True)


# ------------------------------- wrapper ------------------------------------
def breast_cnn_forward(x_nchw, params):
    B, Cin, H, W = x_nchw.shape
    C1 = params["w1"].shape[1]
    KH, KW, _, C2 = params["w2"].shape
    N = params["wf"].shape[1]
    Hp1, Wp1 = H // 2, W // 2
    H2, W2 = Hp1 - KH + 1, Wp1 - KW + 1
    Hf, Wf = H2 // 2, W2 // 2
    S = Hf * Wf
    assert H2 >= 1 and W2 >= 1 and Hf >= 1 and Wf >= 1
    assert params["wf"].shape[0] == C2 * S

    L = Hp1 * Wp1                       # valid pool1 rows per batch element
    RB = _round_up(L, 8)                # per-batch row stride in p1f / y2
    MF = H2 * Wp1                       # flattened conv2 rows per element
    P1_ROWS = _round_up(max((B - 1) * RB + L + KW - 1, B * RB), 8)
    MROWS = P1_ROWS - (KH - 1) * Wp1    # conv2 matmul M (covers all batches)
    MOUT = (B - 1) * RB + MF            # conv2 output rows (all batches)
    assert MROWS >= MOUT + KW - 1

    # ---- input layout plumbing (a few KB, done once by XLA outside kernel):
    # NCHW -> NHWC -> 4 pooling quadrants, spatial flattened into rows, batch
    # stacked at stride RB, tail zero-padded to P1_ROWS.
    x = jnp.transpose(x_nchw.astype(jnp.float32), (0, 2, 3, 1))
    x = x[:, :2 * Hp1, :2 * Wp1, :]
    quads = []
    for hp in range(2):
        for wp in range(2):
            q = x[:, hp::2, wp::2, :].reshape(B, L, Cin)
            if RB > L:
                q = jnp.pad(q, ((0, 0), (0, RB - L), (0, 0)))
            q = q.reshape(B * RB, Cin)
            q = jnp.pad(q, ((0, P1_ROWS - B * RB), (0, 0)))
            quads.append(q)
    x4q = jnp.stack(quads, axis=0)                        # (4, P1_ROWS, Cin)

    # conv2 weights with the KW taps folded into the output (lane) dim.
    w2r = jnp.transpose(params["w2"], (0, 2, 1, 3)).reshape(KH, C1, KW * C2)
    # fc weight permuted so a spatial-major feature row matches NCHW flatten.
    wf2 = jnp.transpose(params["wf"].reshape(C2, S, N), (1, 0, 2)).reshape(
        S * C2, N)

    kernel = functools.partial(
        _fused_kernel, B=B, Cin=Cin, C1=C1, C2=C2, KH=KH, KW=KW, Wp1=Wp1,
        H2=H2, Hf=Hf, Wf=Wf, RB=RB, MROWS=MROWS, MOUT=MOUT)

    out = pl.pallas_call(
        kernel,
        out_shape=jax.ShapeDtypeStruct((B, N), jnp.float32),
        grid=(1,),                                       # one fused step
        in_specs=[
            pl.BlockSpec((4, P1_ROWS, Cin), lambda i: (0, 0, 0)),
            pl.BlockSpec((Cin, C1), lambda i: (0, 0)),
            pl.BlockSpec((1, C1), lambda i: (0, 0)),
            pl.BlockSpec((KH, C1, KW * C2), lambda i: (0, 0, 0)),
            pl.BlockSpec((1, C2), lambda i: (0, 0)),
            pl.BlockSpec((S * C2, N), lambda i: (0, 0)),
            pl.BlockSpec((1, N), lambda i: (0, 0)),
        ],
        out_specs=pl.BlockSpec((B, N), lambda i: (0, 0)),
        scratch_shapes=[pltpu.VMEM((P1_ROWS, C1), jnp.float32)],  # p1f slab
        compiler_params=pltpu.CompilerParams(
            dimension_semantics=("arbitrary",)),
    )(x4q, params["w1"], params["b1"].reshape(1, C1),
      w2r, params["b2"].reshape(1, C2), wf2, params["bf"].reshape(1, N))
    return out


# ----------------------------- pure-JAX reference ---------------------------
def ref_forward(x_nchw, p):
    x = jnp.transpose(x_nchw, (0, 2, 3, 1))
    dn = ("NHWC", "HWIO", "NHWC")
    hi = lax.Precision.HIGHEST
    cin = p["w1"].shape[0]
    y = lax.conv_general_dilated(x, p["w1"].reshape(1, 1, cin, -1), (1, 1),
                                 "VALID", dimension_numbers=dn,
                                 precision=hi) + p["b1"]
    y = jnp.maximum(y, 0.0)
    y = lax.reduce_window(y, -jnp.inf, lax.max, (1, 2, 2, 1), (1, 2, 2, 1),
                          "VALID")
    y = lax.conv_general_dilated(y, p["w2"], (1, 1), "VALID",
                                 dimension_numbers=dn, precision=hi) + p["b2"]
    y = jnp.maximum(y, 0.0)
    y = lax.reduce_window(y, -jnp.inf, lax.max, (1, 2, 2, 1), (1, 2, 2, 1),
                          "VALID")
    feat = jnp.transpose(y, (0, 3, 1, 2)).reshape(x.shape[0], -1)
    z = jnp.dot(feat, p["wf"], precision=hi) + p["bf"]
    return jax.nn.softmax(z, axis=1)


if __name__ == "__main__":
    # Small shapes consistent with the module: batch=2, in_channels=1,
    # image_size=(20, 16).  Shape trace (NCHW):
    #   (2,1,20,16) -conv1-> (2,64,20,16) -pool-> (2,64,10,8)
    #   -conv2-> (2,16,6,4) -pool-> (2,16,3,2) -flatten-> (2,96) -fc-> (2,2)
    B, Cin, H, W = 2, 1, 20, 16
    Hf, Wf = ((H // 2) - 4) // 2, ((W // 2) - 4) // 2
    F = 16 * Hf * Wf

    key = jax.random.PRNGKey(0)
    kx, k1, k2, k3, k4, k5, k6 = jax.random.split(key, 7)
    x = jax.random.normal(kx, (B, Cin, H, W), jnp.float32)
    params = {
        "w1": 0.1 * jax.random.normal(k1, (Cin, 64), jnp.float32),
        "b1": 0.1 * jax.random.normal(k2, (64,), jnp.float32),
        "w2": 0.1 * jax.random.normal(k3, (5, 5, 64, 16), jnp.float32),
        "b2": 0.1 * jax.random.normal(k4, (16,), jnp.float32),
        "wf": 0.1 * jax.random.normal(k5, (F, 2), jnp.float32),
        "bf": 0.1 * jax.random.normal(k6, (2,), jnp.float32),
    }

    fwd = jax.jit(breast_cnn_forward)
    out = jax.block_until_ready(fwd(x, params))
    ref = jax.block_until_ready(ref_forward(x, params))

    assert out.shape == (B, 2), out.shape
    assert jnp.allclose(out, ref, atol=1e-3, rtol=1e-3), (out, ref)
    print("KERNEL_OK")
</pallas_src>

<mosaic_0001>
module attributes {stable_mosaic.version = 11 : i64} {
  func.func @_fused_kernel(%arg0: i32, %arg1: memref<4x168x1xf32, #tpu.memory_space<vmem>>, %arg2: memref<1x64xf32, #tpu.memory_space<vmem>>, %arg3: memref<1x64xf32, #tpu.memory_space<vmem>>, %arg4: memref<5x64x80xf32, #tpu.memory_space<vmem>>, %arg5: memref<1x16xf32, #tpu.memory_space<vmem>>, %arg6: memref<96x2xf32, #tpu.memory_space<vmem>>, %arg7: memref<1x2xf32, #tpu.memory_space<vmem>>, %arg8: memref<2x2xf32, #tpu.memory_space<vmem>>, %arg9: memref<168x64xf32, #tpu.memory_space<vmem>>) attributes {dimension_semantics = [#tpu.dimension_semantics<arbitrary>], iteration_bounds = array<i64: 1>, scalar_prefetch = 0 : i64, scratch_operands = 1 : i64, tpu.core_type = #tpu.core_type<tc>, window_params = [{pipeline_mode = #tpu.pipeline_mode<synchronous>, transform_indices = @transform_0, window_bounds = array<i64: 4, 168, 1>}, {pipeline_mode = #tpu.pipeline_mode<synchronous>, transform_indices = @transform_1, window_bounds = array<i64: 1, 64>}, {pipeline_mode = #tpu.pipeline_mode<synchronous>, transform_indices = @transform_2, window_bounds = array<i64: 1, 64>}, {pipeline_mode = #tpu.pipeline_mode<synchronous>, transform_indices = @transform_3, window_bounds = array<i64: 5, 64, 80>}, {pipeline_mode = #tpu.pipeline_mode<synchronous>, transform_indices = @transform_4, window_bounds = array<i64: 1, 16>}, {pipeline_mode = #tpu.pipeline_mode<synchronous>, transform_indices = @transform_5, window_bounds = array<i64: 96, 2>}, {pipeline_mode = #tpu.pipeline_mode<synchronous>, transform_indices = @transform_6, window_bounds = array<i64: 1, 2>}, {pipeline_mode = #tpu.pipeline_mode<synchronous>, transform_indices = @transform_7, window_bounds = array<i64: 2, 2>}]} {
    %c0 = arith.constant 0 : index
    %c0_0 = arith.constant 0 : index
    %0 = vector.load %arg2[%c0, %c0_0] : memref<1x64xf32, #tpu.memory_space<vmem>>, vector<1x64xf32>
    %c0_1 = arith.constant 0 : index
    %c0_2 = arith.constant 0 : index
    %c0_3 = arith.constant 0 : index
    %1 = vector.load %arg1[%c0_1, %c0_2, %c0_3] : memref<4x168x1xf32, #tpu.memory_space<vmem>>, vector<1x168x1xf32>
    %2 = vector.shape_cast %1 : vector<1x168x1xf32> to vector<168x1xf32>
    %3 = vector.broadcast %2 : vector<168x1xf32> to vector<168x64xf32>
    %4 = vector.broadcast %0 : vector<1x64xf32> to vector<168x64xf32>
    %5 = arith.mulf %3, %4 : vector<168x64xf32>
    %c1 = arith.constant 1 : index
    %c0_4 = arith.constant 0 : index
    %c0_5 = arith.constant 0 : index
    %6 = vector.load %arg1[%c1, %c0_4, %c0_5] : memref<4x168x1xf32, #tpu.memory_space<vmem>>, vector<1x168x1xf32>
    %7 = vector.shape_cast %6 : vector<1x168x1xf32> to vector<168x1xf32>
    %8 = vector.broadcast %7 : vector<168x1xf32> to vector<168x64xf32>
    %9 = vector.broadcast %0 : vector<1x64xf32> to vector<168x64xf32>
    %10 = arith.mulf %8, %9 : vector<168x64xf32>
    %11 = arith.maximumf %5, %10 : vector<168x64xf32>
    %c2 = arith.constant 2 : index
    %c0_6 = arith.constant 0 : index
    %c0_7 = arith.constant 0 : index
    %12 = vector.load %arg1[%c2, %c0_6, %c0_7] : memref<4x168x1xf32, #tpu.memory_space<vmem>>, vector<1x168x1xf32>
    %13 = vector.shape_cast %12 : vector<1x168x1xf32> to vector<168x1xf32>
    %14 = vector.broadcast %13 : vector<168x1xf32> to vector<168x64xf32>
    %15 = vector.broadcast %0 : vector<1x64xf32> to vector<168x64xf32>
    %16 = arith.mulf %14, %15 : vector<168x64xf32>
    %17 = arith.maximumf %11, %16 : vector<168x64xf32>
    %c3 = arith.constant 3 : index
    %c0_8 = arith.constant 0 : index
    %c0_9 = arith.constant 0 : index
    %18 = vector.load %arg1[%c3, %c0_8, %c0_9] : memref<4x168x1xf32, #tpu.memory_space<vmem>>, vector<1x168x1xf32>
    %19 = vector.shape_cast %18 : vector<1x168x1xf32> to vector<168x1xf32>
    %20 = vector.broadcast %19 : vector<168x1xf32> to vector<168x64xf32>
    %21 = vector.broadcast %0 : vector<1x64xf32> to vector<168x64xf32>
    %22 = arith.mulf %20, %21 : vector<168x64xf32>
    %23 = arith.maximumf %17, %22 : vector<168x64xf32>
    %c0_10 = arith.constant 0 : index
    %c0_11 = arith.constant 0 : index
    %24 = vector.load %arg3[%c0_10, %c0_11] : memref<1x64xf32, #tpu.memory_space<vmem>>, vector<1x64xf32>
    %25 = vector.broadcast %24 : vector<1x64xf32> to vector<168x64xf32>
    %26 = arith.addf %23, %25 : vector<168x64xf32>
    %cst = arith.constant 0.000000e+00 : f32
    %27 = vector.broadcast %cst : f32 to vector<168x64xf32>
    %28 = arith.maximumf %26, %27 : vector<168x64xf32>
    %c0_12 = arith.constant 0 : index
    %c0_13 = arith.constant 0 : index
    %29 = vector.load %arg9[%c0_12, %c0_13] : memref<168x64xf32, #tpu.memory_space<vmem>>, vector<168x64xf32>
    tpu.vector_store %arg9[%c0_12, %c0_13], %28 {strides = array<i32>} : memref<168x64xf32, #tpu.memory_space<vmem>>, vector<168x64xf32>,
    %c0_14 = arith.constant 0 : index
    %c0_15 = arith.constant 0 : index
    %30 = vector.load %arg9[%c0_14, %c0_15] : memref<168x64xf32, #tpu.memory_space<vmem>>, vector<136x64xf32>
    %c0_16 = arith.constant 0 : index
    %c0_17 = arith.constant 0 : index
    %c0_18 = arith.constant 0 : index
    %31 = vector.load %arg4[%c0_16, %c0_17, %c0_18] : memref<5x64x80xf32, #tpu.memory_space<vmem>>, vector<1x64x80xf32>
    %32 = vector.shape_cast %31 : vector<1x64x80xf32> to vector<64x80xf32>
    %cst_19 = arith.constant dense<0.000000e+00> : vector<136x80xf32>
    %33 = tpu.matmul %30, %32, %cst_19 {dimension_numbers = #tpu.dot_dimension_numbers<[1], [0], [0], [1], [0, 0, 1, 1], [], []>} : vector<136x64xf32>, vector<64x80xf32>, vector<136x80xf32> -> vector<136x80xf32>
    %c8 = arith.constant 8 : index
    %c0_20 = arith.constant 0 : index
    %34 = vector.load %arg9[%c8, %c0_20] : memref<168x64xf32, #tpu.memory_space<vmem>>, vector<136x64xf32>
    %c1_21 = arith.constant 1 : index
    %c0_22 = arith.constant 0 : index
    %c0_23 = arith.constant 0 : index
    %35 = vector.load %arg4[%c1_21, %c0_22, %c0_23] : memref<5x64x80xf32, #tpu.memory_space<vmem>>, vector<1x64x80xf32>
    %36 = vector.shape_cast %35 : vector<1x64x80xf32> to vector<64x80xf32>
    %cst_24 = arith.constant dense<0.000000e+00> : vector<136x80xf32>
    %37 = tpu.matmul %34, %36, %cst_24 {dimension_numbers = #tpu.dot_dimension_numbers<[1], [0], [0], [1], [0, 0, 1, 1], [], []>} : vector<136x64xf32>, vector<64x80xf32>, vector<136x80xf32> -> vector<136x80xf32>
    %38 = arith.addf %33, %37 : vector<136x80xf32>
    %c16 = arith.constant 16 : index
    %c0_25 = arith.constant 0 : index
    %39 = vector.load %arg9[%c16, %c0_25] : memref<168x64xf32, #tpu.memory_space<vmem>>, vector<136x64xf32>
    %c2_26 = arith.constant 2 : index
    %c0_27 = arith.constant 0 : index
    %c0_28 = arith.constant 0 : index
    %40 = vector.load %arg4[%c2_26, %c0_27, %c0_28] : memref<5x64x80xf32, #tpu.memory_space<vmem>>, vector<1x64x80xf32>
    %41 = vector.shape_cast %40 : vector<1x64x80xf32> to vector<64x80xf32>
    %cst_29 = arith.constant dense<0.000000e+00> : vector<136x80xf32>
    %42 = tpu.matmul %39, %41, %cst_29 {dimension_numbers = #tpu.dot_dimension_numbers<[1], [0], [0], [1], [0, 0, 1, 1], [], []>} : vector<136x64xf32>, vector<64x80xf32>, vector<136x80xf32> -> vector<136x80xf32>
    %43 = arith.addf %38, %42 : vector<136x80xf32>
    %c24 = arith.constant 24 : index
    %c0_30 = arith.constant 0 : index
    %44 = vector.load %arg9[%c24, %c0_30] : memref<168x64xf32, #tpu.memory_space<vmem>>, vector<136x64xf32>
    %c3_31 = arith.constant 3 : index
    %c0_32 = arith.constant 0 : index
    %c0_33 = arith.constant 0 : index
    %45 = vector.load %arg4[%c3_31, %c0_32, %c0_33] : memref<5x64x80xf32, #tpu.memory_space<vmem>>, vector<1x64x80xf32>
    %46 = vector.shape_cast %45 : vector<1x64x80xf32> to vector<64x80xf32>
    %cst_34 = arith.constant dense<0.000000e+00> : vector<136x80xf32>
    %47 = tpu.matmul %44, %46, %cst_34 {dimension_numbers = #tpu.dot_dimension_numbers<[1], [0], [0], [1], [0, 0, 1, 1], [], []>} : vector<136x64xf32>, vector<64x80xf32>, vector<136x80xf32> -> vector<136x80xf32>
    %48 = arith.addf %43, %47 : vector<136x80xf32>
    %c32 = arith.constant 32 : index
    %c0_35 = arith.constant 0 : index
    %49 = vector.load %arg9[%c32, %c0_35] : memref<168x64xf32, #tpu.memory_space<vmem>>, vector<136x64xf32>
    %c4 = arith.constant 4 : index
    %c0_36 = arith.constant 0 : index
    %c0_37 = arith.constant 0 : index
    %50 = vector.load %arg4[%c4, %c0_36, %c0_37] : memref<5x64x80xf32, #tpu.memory_space<vmem>>, vector<1x64x80xf32>
    %51 = vector.shape_cast %50 : vector<1x64x80xf32> to vector<64x80xf32>
    %cst_38 = arith.constant dense<0.000000e+00> : vector<136x80xf32>
    %52 = tpu.matmul %49, %51, %cst_38 {dimension_numbers = #tpu.dot_dimension_numbers<[1], [0], [0], [1], [0, 0, 1, 1], [], []>} : vector<136x64xf32>, vector<64x80xf32>, vector<136x80xf32> -> vector<136x80xf32>
    %53 = arith.addf %48, %52 : vector<136x80xf32>
    %54 = vector.extract_strided_slice %53 {offsets = [0, 0], sizes = [128, 16], strides = [1, 1]} : vector<136x80xf32> to vector<128x16xf32>
    %55 = vector.extract_strided_slice %53 {offsets = [1, 16], sizes = [128, 16], strides = [1, 1]} : vector<136x80xf32> to vector<128x16xf32>
    %56 = arith.addf %54, %55 : vector<128x16xf32>
    %57 = vector.extract_strided_slice %53 {offsets = [2, 32], sizes = [128, 16], strides = [1, 1]} : vector<136x80xf32> to vector<128x16xf32>
    %58 = arith.addf %56, %57 : vector<128x16xf32>
    %59 = vector.extract_strided_slice %53 {offsets = [3, 48], sizes = [128, 16], strides = [1, 1]} : vector<136x80xf32> to vector<128x16xf32>
    %60 = arith.addf %58, %59 : vector<128x16xf32>
    %61 = vector.extract_strided_slice %53 {offsets = [4, 64], sizes = [128, 16], strides = [1, 1]} : vector<136x80xf32> to vector<128x16xf32>
    %62 = arith.addf %60, %61 : vector<128x16xf32>
    %c0_39 = arith.constant 0 : index
    %c0_40 = arith.constant 0 : index
    %63 = vector.load %arg5[%c0_39, %c0_40] : memref<1x16xf32, #tpu.memory_space<vmem>>, vector<1x16xf32>
    %64 = vector.broadcast %63 : vector<1x16xf32> to vector<128x16xf32>
    %65 = arith.addf %62, %64 : vector<128x16xf32>
    %cst_41 = arith.constant 0.000000e+00 : f32
    %66 = vector.broadcast %cst_41 : f32 to vector<128x16xf32>
    %67 = arith.maximumf %65, %66 : vector<128x16xf32>
    %c0_42 = arith.constant 0 : index
    %c0_43 = arith.constant 0 : index
    %68 = vector.load %arg6[%c0_42, %c0_43] : memref<96x2xf32, #tpu.memory_space<vmem>>, vector<96x2xf32>
    %c0_44 = arith.constant 0 : index
    %c0_45 = arith.constant 0 : index
    %69 = vector.load %arg7[%c0_44, %c0_45] : memref<1x2xf32, #tpu.memory_space<vmem>>, vector<1x2xf32>
    %70 = vector.extract_strided_slice %67 {offsets = [0, 0], sizes = [48, 16], strides = [1, 1]} : vector<128x16xf32> to vector<48x16xf32>
    %71 = vector.extract_strided_slice %70 {offsets = [0, 0], sizes = [8, 16], strides = [1, 1]} : vector<48x16xf32> to vector<8x16xf32>
    %72 = vector.extract_strided_slice %70 {offsets = [8, 0], sizes = [8, 16], strides = [1, 1]} : vector<48x16xf32> to vector<8x16xf32>
    %73 = arith.maximumf %71, %72 : vector<8x16xf32>
    %74 = vector.extract_strided_slice %73 {offsets = [0, 0], sizes = [1, 16], strides = [1, 1]} : vector<8x16xf32> to vector<1x16xf32>
    %75 = vector.extract_strided_slice %73 {offsets = [1, 0], sizes = [1, 16], strides = [1, 1]} : vector<8x16xf32> to vector<1x16xf32>
    %76 = arith.maximumf %74, %75 : vector<1x16xf32>
    %77 = vector.extract_strided_slice %73 {offsets = [2, 0], sizes = [1, 16], strides = [1, 1]} : vector<8x16xf32> to vector<1x16xf32>
    %78 = vector.extract_strided_slice %73 {offsets = [3, 0], sizes = [1, 16], strides = [1, 1]} : vector<8x16xf32> to vector<1x16xf32>
    %79 = arith.maximumf %77, %78 : vector<1x16xf32>
    %80 = vector.extract_strided_slice %70 {offsets = [16, 0], sizes = [8, 16], strides = [1, 1]} : vector<48x16xf32> to vector<8x16xf32>
    %81 = vector.extract_strided_slice %70 {offsets = [24, 0], sizes = [8, 16], strides = [1, 1]} : vector<48x16xf32> to vector<8x16xf32>
    %82 = arith.maximumf %80, %81 : vector<8x16xf32>
    %83 = vector.extract_strided_slice %82 {offsets = [0, 0], sizes = [1, 16], strides = [1, 1]} : vector<8x16xf32> to vector<1x16xf32>
    %84 = vector.extract_strided_slice %82 {offsets = [1, 0], sizes = [1, 16], strides = [1, 1]} : vector<8x16xf32> to vector<1x16xf32>
    %85 = arith.maximumf %83, %84 : vector<1x16xf32>
    %86 = vector.extract_strided_slice %82 {offsets = [2, 0], sizes = [1, 16], strides = [1, 1]} : vector<8x16xf32> to vector<1x16xf32>
    %87 = vector.extract_strided_slice %82 {offsets = [3, 0], sizes = [1, 16], strides = [1, 1]} : vector<8x16xf32> to vector<1x16xf32>
    %88 = arith.maximumf %86, %87 : vector<1x16xf32>
    %89 = vector.extract_strided_slice %70 {offsets = [32, 0], sizes = [8, 16], strides = [1, 1]} : vector<48x16xf32> to vector<8x16xf32>
    %90 = vector.extract_strided_slice %70 {offsets = [40, 0], sizes = [8, 16], strides = [1, 1]} : vector<48x16xf32> to vector<8x16xf32>
    %91 = arith.maximumf %89, %90 : vector<8x16xf32>
    %92 = vector.extract_strided_slice %91 {offsets = [0, 0], sizes = [1, 16], strides = [1, 1]} : vector<8x16xf32> to vector<1x16xf32>
    %93 = vector.extract_strided_slice %91 {offsets = [1, 0], sizes = [1, 16], strides = [1, 1]} : vector<8x16xf32> to vector<1x16xf32>
    %94 = arith.maximumf %92, %93 : vector<1x16xf32>
    %95 = vector.extract_strided_slice %91 {offsets = [2, 0], sizes = [1, 16], strides = [1, 1]} : vector<8x16xf32> to vector<1x16xf32>
    %96 = vector.extract_strided_slice %91 {offsets = [3, 0], sizes = [1, 16], strides = [1, 1]} : vector<8x16xf32> to vector<1x16xf32>
    %97 = arith.maximumf %95, %96 : vector<1x16xf32>
    %98 = tpu.concatenate %76, %79, %85, %88, %94, %97 in 1 : vector<1x16xf32>, vector<1x16xf32>, vector<1x16xf32>, vector<1x16xf32>, vector<1x16xf32>, vector<1x16xf32> -> vector<1x96xf32>
    %cst_46 = arith.constant dense<0.000000e+00> : vector<1x2xf32>
    %99 = tpu.matmul %98, %68, %cst_46 {dimension_numbers = #tpu.dot_dimension_numbers<[1], [0], [0], [1], [0, 0, 1, 1], [], []>} : vector<1x96xf32>, vector<96x2xf32>, vector<1x2xf32> -> vector<1x2xf32>
    %100 = arith.addf %99, %69 : vector<1x2xf32>
    %cst_47 = arith.constant dense<0xFF800000> : vector<1xf32>
    %101 = vector.multi_reduction <maximumf>, %100, %cst_47 [1] : vector<1x2xf32> to vector<1xf32>
    %102 = vector.shape_cast %101 : vector<1xf32> to vector<1x1xf32>
    %103 = vector.broadcast %102 : vector<1x1xf32> to vector<1x2xf32>
    %104 = arith.subf %100, %103 : vector<1x2xf32>
    %105 = math.exp %104 : vector<1x2xf32>
    %cst_48 = arith.constant dense<0.000000e+00> : vector<1xf32>
    %106 = vector.multi_reduction <add>, %105, %cst_48 [1] : vector<1x2xf32> to vector<1xf32>
    %107 = vector.shape_cast %106 : vector<1xf32> to vector<1x1xf32>
    %108 = vector.broadcast %107 : vector<1x1xf32> to vector<1x2xf32>
    %109 = arith.divf %105, %108 : vector<1x2xf32>
    %c0_49 = arith.constant 0 : index
    %c0_50 = arith.constant 0 : index
    %110 = vector.load %arg8[%c0_49, %c0_50] : memref<2x2xf32, #tpu.memory_space<vmem>>, vector<1x2xf32>
    tpu.vector_store %arg8[%c0_49, %c0_50], %109 {strides = array<i32>} : memref<2x2xf32, #tpu.memory_space<vmem>>, vector<1x2xf32>,
    %111 = vector.extract_strided_slice %67 {offsets = [80, 0], sizes = [48, 16], strides = [1, 1]} : vector<128x16xf32> to vector<48x16xf32>
    %112 = vector.extract_strided_slice %111 {offsets = [0, 0], sizes = [8, 16], strides = [1, 1]} : vector<48x16xf32> to vector<8x16xf32>
    %113 = vector.extract_strided_slice %111 {offsets = [8, 0], sizes = [8, 16], strides = [1, 1]} : vector<48x16xf32> to vector<8x16xf32>
    %114 = arith.maximumf %112, %113 : vector<8x16xf32>
    %115 = vector.extract_strided_slice %114 {offsets = [0, 0], sizes = [1, 16], strides = [1, 1]} : vector<8x16xf32> to vector<1x16xf32>
    %116 = vector.extract_strided_slice %114 {offsets = [1, 0], sizes = [1, 16], strides = [1, 1]} : vector<8x16xf32> to vector<1x16xf32>
    %117 = arith.maximumf %115, %116 : vector<1x16xf32>
    %118 = vector.extract_strided_slice %114 {offsets = [2, 0], sizes = [1, 16], strides = [1, 1]} : vector<8x16xf32> to vector<1x16xf32>
    %119 = vector.extract_strided_slice %114 {offsets = [3, 0], sizes = [1, 16], strides = [1, 1]} : vector<8x16xf32> to vector<1x16xf32>
    %120 = arith.maximumf %118, %119 : vector<1x16xf32>
    %121 = vector.extract_strided_slice %111 {offsets = [16, 0], sizes = [8, 16], strides = [1, 1]} : vector<48x16xf32> to vector<8x16xf32>
    %122 = vector.extract_strided_slice %111 {offsets = [24, 0], sizes = [8, 16], strides = [1, 1]} : vector<48x16xf32> to vector<8x16xf32>
    %123 = arith.maximumf %121, %122 : vector<8x16xf32>
    %124 = vector.extract_strided_slice %123 {offsets = [0, 0], sizes = [1, 16], strides = [1, 1]} : vector<8x16xf32> to vector<1x16xf32>
    %125 = vector.extract_strided_slice %123 {offsets = [1, 0], sizes = [1, 16], strides = [1, 1]} : vector<8x16xf32> to vector<1x16xf32>
    %126 = arith.maximumf %124, %125 : vector<1x16xf32>
    %127 = vector.extract_strided_slice %123 {offsets = [2, 0], sizes = [1, 16], strides = [1, 1]} : vector<8x16xf32> to vector<1x16xf32>
    %128 = vector.extract_strided_slice %123 {offsets = [3, 0], sizes = [1, 16], strides = [1, 1]} : vector<8x16xf32> to vector<1x16xf32>
    %129 = arith.maximumf %127, %128 : vector<1x16xf32>
    %130 = vector.extract_strided_slice %111 {offsets = [32, 0], sizes = [8, 16], strides = [1, 1]} : vector<48x16xf32> to vector<8x16xf32>
    %131 = vector.extract_strided_slice %111 {offsets = [40, 0], sizes = [8, 16], strides = [1, 1]} : vector<48x16xf32> to vector<8x16xf32>
    %132 = arith.maximumf %130, %131 : vector<8x16xf32>
    %133 = vector.extract_strided_slice %132 {offsets = [0, 0], sizes = [1, 16], strides = [1, 1]} : vector<8x16xf32> to vector<1x16xf32>
    %134 = vector.extract_strided_slice %132 {offsets = [1, 0], sizes = [1, 16], strides = [1, 1]} : vector<8x16xf32> to vector<1x16xf32>
    %135 = arith.maximumf %133, %134 : vector<1x16xf32>
    %136 = vector.extract_strided_slice %132 {offsets = [2, 0], sizes = [1, 16], strides = [1, 1]} : vector<8x16xf32> to vector<1x16xf32>
    %137 = vector.extract_strided_slice %132 {offsets = [3, 0], sizes = [1, 16], strides = [1, 1]} : vector<8x16xf32> to vector<1x16xf32>
    %138 = arith.maximumf %136, %137 : vector<1x16xf32>
    %139 = tpu.concatenate %117, %120, %126, %129, %135, %138 in 1 : vector<1x16xf32>, vector<1x16xf32>, vector<1x16xf32>, vector<1x16xf32>, vector<1x16xf32>, vector<1x16xf32> -> vector<1x96xf32>
    %cst_51 = arith.constant dense<0.000000e+00> : vector<1x2xf32>
    %140 = tpu.matmul %139, %68, %cst_51 {dimension_numbers = #tpu.dot_dimension_numbers<[1], [0], [0], [1], [0, 0, 1, 1], [], []>} : vector<1x96xf32>, vector<96x2xf32>, vector<1x2xf32> -> vector<1x2xf32>
    %141 = arith.addf %140, %69 : vector<1x2xf32>
    %cst_52 = arith.constant dense<0xFF800000> : vector<1xf32>
    %142 = vector.multi_reduction <maximumf>, %141, %cst_52 [1] : vector<1x2xf32> to vector<1xf32>
    %143 = vector.shape_cast %142 : vector<1xf32> to vector<1x1xf32>
    %144 = vector.broadcast %143 : vector<1x1xf32> to vector<1x2xf32>
    %145 = arith.subf %141, %144 : vector<1x2xf32>
    %146 = math.exp %145 : vector<1x2xf32>
    %cst_53 = arith.constant dense<0.000000e+00> : vector<1xf32>
    %147 = vector.multi_reduction <add>, %146, %cst_53 [1] : vector<1x2xf32> to vector<1xf32>
    %148 = vector.shape_cast %147 : vector<1xf32> to vector<1x1xf32>
    %149 = vector.broadcast %148 : vector<1x1xf32> to vector<1x2xf32>
    %150 = arith.divf %146, %149 : vector<1x2xf32>
    %c1_54 = arith.constant 1 : index
    %c0_55 = arith.constant 0 : index
    %151 = vector.load %arg8[%c1_54, %c0_55] : memref<2x2xf32, #tpu.memory_space<vmem>>, vector<1x2xf32>
    tpu.vector_store %arg8[%c1_54, %c0_55], %150 {strides = array<i32>} : memref<2x2xf32, #tpu.memory_space<vmem>>, vector<1x2xf32>,
    return
  }
  func.func @transform_0(%arg0: i32) -> (i32, i32, i32) {
    %c0_i32 = arith.constant 0 : i32
    %c0_i32_0 = arith.constant 0 : i32
    %c0_i32_1 = arith.constant 0 : i32
    %c0_i32_2 = arith.constant 0 : i32
    return %c0_i32, %c0_i32_0, %c0_i32_1 : i32, i32, i32
  }
  func.func @transform_1(%arg0: i32) -> (i32, i32) {
    %c0_i32 = arith.constant 0 : i32
    %c0_i32_0 = arith.constant 0 : i32
    %c0_i32_1 = arith.constant 0 : i32
    return %c0_i32, %c0_i32_0 : i32, i32
  }
  func.func @transform_2(%arg0: i32) -> (i32, i32) {
    %c0_i32 = arith.constant 0 : i32
    %c0_i32_0 = arith.constant 0 : i32
    %c0_i32_1 = arith.constant 0 : i32
    return %c0_i32, %c0_i32_0 : i32, i32
  }
  func.func @transform_3(%arg0: i32) -> (i32, i32, i32) {
    %c0_i32 = arith.constant 0 : i32
    %c0_i32_0 = arith.constant 0 : i32
    %c0_i32_1 = arith.constant 0 : i32
    %c0_i32_2 = arith.constant 0 : i32
    return %c0_i32, %c0_i32_0, %c0_i32_1 : i32, i32, i32
  }
  func.func @transform_4(%arg0: i32) -> (i32, i32) {
    %c0_i32 = arith.constant 0 : i32
    %c0_i32_0 = arith.constant 0 : i32
    %c0_i32_1 = arith.constant 0 : i32
    return %c0_i32, %c0_i32_0 : i32, i32
  }
  func.func @transform_5(%arg0: i32) -> (i32, i32) {
    %c0_i32 = arith.constant 0 : i32
    %c0_i32_0 = arith.constant 0 : i32
    %c0_i32_1 = arith.constant 0 : i32
    return %c0_i32, %c0_i32_0 : i32, i32
  }
  func.func @transform_6(%arg0: i32) -> (i32, i32) {
    %c0_i32 = arith.constant 0 : i32
    %c0_i32_0 = arith.constant 0 : i32
    %c0_i32_1 = arith.constant 0 : i32
    return %c0_i32, %c0_i32_0 : i32, i32
  }
  func.func @transform_7(%arg0: i32) -> (i32, i32) {
    %c0_i32 = arith.constant 0 : i32
    %c0_i32_0 = arith.constant 0 : i32
    %c0_i32_1 = arith.constant 0 : i32
    return %c0_i32, %c0_i32_0 : i32, i32
  }
}

</mosaic_0001>

<bundles_post_ra>
// kernel: breast_cnn_forward.1
= control target key start
LH: loop header
LB: loop body
LE: loop exit
PB: predicated region body
PF: predicated region fallthrough
CT: control target
= control target key end

     0   :  { %v3270_v2 = vmov 0   ;;  %v3271_v7 = vmov 0.0   ;;  %vm3272_vm0 = vmmov 0   ;;  %s4684_s0 = inlined_call_operand.vmem [shape: f32[4,168,1], index: 0, kind: input, shape index: {}]   ;;  %s4685_s1 = inlined_call_operand.vmem [shape: f32[1,64], index: 1, kind: input, shape index: {}]   ;;  %s4686_s2 = inlined_call_operand.vmem [shape: f32[1,64], index: 2, kind: input, shape index: {}]   ;;  %s4687_s3 = inlined_call_operand.vmem [shape: f32[5,64,80], index: 3, kind: input, shape index: {}]   ;;  %s4688_s4 = inlined_call_operand.vmem [shape: f32[1,16], index: 4, kind: input, shape index: {}]   ;;  %s4689_s5 = inlined_call_operand.vmem [shape: f32[96,2], index: 5, kind: input, shape index: {}]   ;;  %s4690_s6 = inlined_call_operand.vmem [shape: f32[1,2], index: 6, kind: input, shape index: {}]   ;;  %s4691_s7 = inlined_call_operand.hbm [shape: f32[2,2], index: 7, kind: output, shape index: {}]  }
   0x1   :  { %v2509_v0 = vld [vmem:[%s4684_s0 + $0x158] sm:$0xff]  ;;  %v29_v1 = vld [vmem:[%s4684_s0 + $0x8] sm:$0xff]  ;;  %3239 = vset.pattern.permute.xlu1 %v3270_v2  ;;  %3238 = vset.pattern.permute.xlu0 %v3270_v2  ;;  %v30_v3 = vld [vmem:[%s4684_s0 + $0x10] sm:$0xff] }
   0x2   :  { %379 = vperm.xlu1 %3239, %v2509_v0   ;;  %56 = vperm.xlu0 %3238, %v29_v1   ;;  %v2488_v4 = vld [vmem:[%s4684_s0 + $0xb0] sm:$0xff]  ;;  %v2530_v5 = vld [vmem:[%s4684_s0 + $0x200] sm:$0xff]  ;;  %v2489_v6 = vld [vmem:[%s4684_s0 + $0xb8] sm:$0xff] }
   0x3   :  { %2822 = vmatprep.subr.mxu0 %v3271_v7  ;;  %3211 = vmatprep.subr.mxu1 %v3271_v7  ;;  %v31_v8 = vld [vmem:[%s4684_s0 + $0x18] sm:$0xff]  ;;  %v2510_v9 = vld [vmem:[%s4684_s0 + $0x160] sm:$0xff]  ;;  %v2531_v10 = vld [vmem:[%s4684_s0 + $0x208] sm:$0xff] }
   0x4   :  { %v2490_v11 = vld [vmem:[%s4684_s0 + $0xc0] sm:$0xff]  ;;  %v2511_v13 = vld [vmem:[%s4684_s0 + $0x168] sm:$0xff]  ;;  %2838 = vmatprep.mubr.msk.f32.mxu0 %vm3272_vm0, %v3271_v7  ;;  %2874 = vmatprep.mubr.msk.f32.mxu1 %vm3272_vm0, %v3271_v7  ;;  %v2532_v14 = vld [vmem:[%s4684_s0 + $0x210] sm:$0xff] }
   0x5   :  { %v32_v12 = vld [vmem:[%s4684_s0 + $0x20] sm:$0xff]  ;;  %v2491_v15 = vld [vmem:[%s4684_s0 + $0xc8] sm:$0xff]  ;;  %v2558_v16 = vld [vmem:[%s4687_s3 + $0x78] sm:$0xff] }
   0x6   :  { %61 = vperm.xlu1 %3239, %v30_v3   ;;  %210 = vperm.xlu0 %3238, %v2488_v4   ;;  %v2557_v17 = vld [vmem:[%s4687_s3 + $0x70] sm:$0xff]  ;;  %v2556_v18 = vld [vmem:[%s4687_s3 + $0x68] sm:$0xff]  ;;  %v2555_v21 = vld [vmem:[%s4687_s3 + $0x60] sm:$0xff] }
   0x7   :  { %2823 = vmatpush3.msra.mxu0 %v2558_v16  ;;  %3219 = vmatpush3.msra.mxu1 %v2558_v16  ;;  %v33_v19 = vld [vmem:[%s4684_s0 + $0x28] sm:$0xff]  ;;  %v2512_v20 = vld [vmem:[%s4684_s0 + $0x170] sm:$0xff] }
   0x8   :  { %2824 = vmatprep.subr.mxu0 %v3271_v7  ;;  %3212 = vmatprep.subr.mxu1 %v3271_v7 }
   0x9   :  { %2825 = vmatpush3.msra.mxu0 %v2557_v17  ;;  %3220 = vmatpush3.msra.mxu1 %v2557_v17 }
   0xa   :  { %548 = vperm.xlu1 %3239, %v2530_v5   ;;  %215 = vperm.xlu0 %3238, %v2489_v6  }
   0xb   :  { %2826 = vmatprep.subr.mxu0 %v3271_v7  ;;  %3213 = vmatprep.subr.mxu1 %v3271_v7 }
   0xc   :  { %2827 = vmatpush3.msra.mxu0 %v2556_v18  ;;  %3221 = vmatpush3.msra.mxu1 %v2556_v18 }
   0xe   :  { %66 = vperm.xlu1 %3239, %v31_v8   ;;  %384 = vperm.xlu0 %3238, %v2510_v9  }
  0x12   :  { %553 = vperm.xlu1 %3239, %v2531_v10   ;;  %220 = vperm.xlu0 %3238, %v2490_v11  }
  0x16   :  { %71 = vperm.xlu1 %3239, %v32_v12   ;;  %389 = vperm.xlu0 %3238, %v2511_v13  }
  0x1a   :  { %558 = vperm.xlu1 %3239, %v2532_v14   ;;  %225 = vperm.xlu0 %3238, %v2491_v15  }
  0x1b   :  { %12 = vsyncpa [#allocation4], 0  ;;  %v2533_v22 = vld [vmem:[%s4684_s0 + $0x218] sm:$0xff]  ;;  %v2492_v23 = vld [vmem:[%s4684_s0 + $0xd0] sm:$0xff]  ;;  %2828 = vmatprep.subr.mxu0 %v3271_v7  ;;  %3214 = vmatprep.subr.mxu1 %v3271_v7  ;;  %vm737_vm1 = vcmask 523264   ;;  %vm1870_vm2 = vcmask 1046528  }
  0x1c   :  { %2829 = vmatpush3.msra.mxu0 %v2555_v21  ;;  %v2554_v24 = vld [vmem:[%s4687_s3 + $0x58] sm:$0xff]  ;;  %3222 = vmatpush3.msra.mxu1 %v2555_v21  ;;  %v2553_v25 = vld [vmem:[%s4687_s3 + $0x50] sm:$0xff]  ;;  %v2552_v28 = vld [vmem:[%s4687_s3 + $0x48] sm:$0xff]  ;;  %vm1945_vm3 = vcmask 1045504   ;;  %s3274_s13 = smov 96   ;;  %vm2020_vm4 = vcmask 1044480  }
  0x1d   :  { %2830 = vmatprep.subr.mxu0 %v3271_v7  ;;  %3215 = vmatprep.subr.mxu1 %v3271_v7  ;;  %v34_v26 = vld [vmem:[%s4684_s0 + $0x30] sm:$0xff]  ;;  %v2513_v27 = vld [vmem:[%s4684_s0 + $0x178] sm:$0xff]  ;;  %v2534_v29 = vld [vmem:[%s4684_s0 + $0x220] sm:$0xff]  ;;  %vm2095_vm5 = vcmask 1043456   ;;  %s3275_s14 = smov 80   ;;  %s3277_s24 = smov 16  }
  0x1e   :  { %76 = vperm.xlu1 %3239, %v33_v19   ;;  %394 = vperm.xlu0 %3238, %v2512_v20   ;;  %v2493_v30 = vld [vmem:[%s4684_s0 + $0xd8] sm:$0xff]  ;;  %v2551_v31 = vld [vmem:[%s4687_s3 + $0x40] sm:$0xff]  ;;  %v2535_v34 = vld [vmem:[%s4684_s0 + $0x228] sm:$0xff]  ;;  %s3278_s12 = smov 32   ;;  %vm2250_vm6 = vcmask 130048   ;;  %vm2252_vm7 = vcmask 261120  }
  0x1f   :  { %2831 = vmatpush3.msra.mxu0 %v2554_v24  ;;  %3223 = vmatpush3.msra.mxu1 %v2554_v24  ;;  %v35_v32 = vld [vmem:[%s4684_s0 + $0x38] sm:$0xff]  ;;  %v2514_v33 = vld [vmem:[%s4684_s0 + $0x180] sm:$0xff]  ;;  %v2500_v36 = vld [vmem:[%s4684_s0 + $0x110] sm:$0xff]  ;;  %vm2254_vm8 = vcmask 392192   ;;  %vm2257_vm9 = vcmask 654336   ;;  %vm2259_vm10 = vcmask 785408  }
  0x20   :  { %2832 = vmatprep.subr.mxu0 %v3271_v7  ;;  %3216 = vmatprep.subr.mxu1 %v3271_v7  ;;  %v2494_v35 = vld [vmem:[%s4684_s0 + $0xe0] sm:$0xff]  ;;  %v41_v37 = vld [vmem:[%s4684_s0 + $0x68] sm:$0xff]  ;;  %v2521_v40 = vld [vmem:[%s4684_s0 + $0x1b8] sm:$0xff]  ;;  %vm2333_vm11 = vcmask 8192  }
  0x21   :  { %2833 = vmatpush3.msra.mxu0 %v2553_v25  ;;  %3224 = vmatpush3.msra.mxu1 %v2553_v25  ;;  %v36_v38 = vld [vmem:[%s4684_s0 + $0x40] sm:$0xff]  ;;  %v2515_v39 = vld [vmem:[%s4684_s0 + $0x188] sm:$0xff]  ;;  %v42_v42 = vld [vmem:[%s4684_s0 + $0x70] sm:$0xff] }
  0x22   :  { %563 = vperm.xlu1 %3239, %v2533_v22   ;;  %230 = vperm.xlu0 %3238, %v2492_v23   ;;  %v2495_v41 = vld [vmem:[%s4684_s0 + $0xe8] sm:$0xff]  ;;  %v2536_v43 = vld [vmem:[%s4684_s0 + $0x230] sm:$0xff]  ;;  %v2501_v45 = vld [vmem:[%s4684_s0 + $0x118] sm:$0xff] }
  0x23   :  { %2834 = vmatprep.subr.mxu0 %v3271_v7  ;;  %3217 = vmatprep.subr.mxu1 %v3271_v7  ;;  %v2516_v44 = vld [vmem:[%s4684_s0 + $0x190] sm:$0xff]  ;;  %v37_v46 = vld [vmem:[%s4684_s0 + $0x48] sm:$0xff]  ;;  %v2542_v47 = vld [vmem:[%s4684_s0 + $0x260] sm:$0xff] }
  0x24   :  { %2835 = vmatpush3.msra.mxu0 %v2552_v28  ;;  %3225 = vmatpush3.msra.mxu1 %v2552_v28  ;;  %v2522_v48 = vld [vmem:[%s4684_s0 + $0x1c0] sm:$0xff]  ;;  %v2496_v49 = vld [vmem:[%s4684_s0 + $0xf0] sm:$0xff]  ;;  %v43_v50 = vld [vmem:[%s4684_s0 + $0x78] sm:$0xff] }
  0x25   :  { %2836 = vmatprep.subr.mxu0 %v3271_v7  ;;  %3218 = vmatprep.subr.mxu1 %v3271_v7  ;;  %v2537_v51 = vld [vmem:[%s4684_s0 + $0x238] sm:$0xff]  ;;  %v2502_v53 = vld [vmem:[%s4684_s0 + $0x120] sm:$0xff]  ;;  %v38_v54 = vld [vmem:[%s4684_s0 + $0x50] sm:$0xff] }
  0x26   :  { %81 = vperm.xlu1 %3239, %v34_v26   ;;  %399 = vperm.xlu0 %3238, %v2513_v27   ;;  %v2517_v52 = vld [vmem:[%s4684_s0 + $0x198] sm:$0xff]  ;;  %v2543_v55 = vld [vmem:[%s4684_s0 + $0x268] sm:$0xff]  ;;  %v44_v58 = vld [vmem:[%s4684_s0 + $0x80] sm:$0xff] }
  0x27   :  { %2837 = vmatpush3.msra.mxu0 %v2551_v31  ;;  %3226 = vmatpush3.msra.mxu1 %v2551_v31  ;;  %v2523_v56 = vld [vmem:[%s4684_s0 + $0x1c8] sm:$0xff]  ;;  %v2497_v57 = vld [vmem:[%s4684_s0 + $0xf8] sm:$0xff]  ;;  %v2538_v59 = vld [vmem:[%s4684_s0 + $0x240] sm:$0xff] }
  0x28   :  { %2956 = vmatprep.subr.mxu0 %v3271_v7  ;;  %2889 = vmatprep.subr.mxu1 %v3271_v7  ;;  %v2518_v60 = vld [vmem:[%s4684_s0 + $0x1a0] sm:$0xff]  ;;  %v2503_v61 = vld [vmem:[%s4684_s0 + $0x128] sm:$0xff]  ;;  %v39_v62 = vld [vmem:[%s4684_s0 + $0x58] sm:$0xff] }
  0x29   :  { %v2544_v63 = vld [vmem:[%s4684_s0 + $0x270] sm:$0xff]  ;;  %v2498_v1 = vld [vmem:[%s4684_s0 + $0x100] sm:$0xff]  ;;  %v45_v2 = vld [vmem:[%s4684_s0 + $0x88] sm:$0xff] }
  0x2a   :  { %568 = vperm.xlu1 %3239, %v2534_v29   ;;  %235 = vperm.xlu0 %3238, %v2493_v30   ;;  %v2524_v0 = vld [vmem:[%s4684_s0 + $0x1d0] sm:$0xff]  ;;  %v2539_v3 = vld [vmem:[%s4684_s0 + $0x248] sm:$0xff]  ;;  %v40_v6 = vld [vmem:[%s4684_s0 + $0x60] sm:$0xff] }
  0x2b   :  { %v2519_v4 = vld [vmem:[%s4684_s0 + $0x1a8] sm:$0xff]  ;;  %v2504_v5 = vld [vmem:[%s4684_s0 + $0x130] sm:$0xff]  ;;  %v2545_v8 = vld [vmem:[%s4684_s0 + $0x278] sm:$0xff] }
  0x2c   :  { %v2525_v9 = vld [vmem:[%s4684_s0 + $0x1d8] sm:$0xff]  ;;  %v2499_v10 = vld [vmem:[%s4684_s0 + $0x108] sm:$0xff]  ;;  %v3562_v13 = vld [vmem:[%s4685_s1] ss:$0 sm:$0xff] }
  0x2d   :  { %v2540_v14 = vld [vmem:[%s4684_s0 + $0x250] sm:$0xff]  ;;  %v28_v15 = vld [vmem:[%s4684_s0] sm:$0xff]  ;;  %v2487_v20 = vld [vmem:[%s4684_s0 + $0xa8] sm:$0xff] }
  0x2e   :  { %86 = vperm.xlu1 %3239, %v35_v32   ;;  %404 = vperm.xlu0 %3238, %v2514_v33   ;;  %v2520_v21 = vld [vmem:[%s4684_s0 + $0x1b0] sm:$0xff]  ;;  %v3583_v28 = vld [vmem:[%s4686_s2] ss:$0 sm:$0xff] }
  0x2f   :  { %v2546_v29 = vld [vmem:[%s4684_s0 + $0x280] sm:$0xff]  ;;  %v2508_v30 = vld [vmem:[%s4684_s0 + $0x150] sm:$0xff] }
  0x32   :  { %573 = vperm.xlu1 %3239, %v2535_v34   ;;  %240 = vperm.xlu0 %3238, %v2494_v35  }
  0x36   :  { %270 = vperm.xlu1 %3239, %v2500_v36   ;;  %116 = vperm.xlu0 %3238, %v41_v37  }
  0x3a   :  { %91 = vperm.xlu1 %3239, %v36_v38   ;;  %409 = vperm.xlu0 %3238, %v2515_v39   ;;  %v2541_v38 = vld [vmem:[%s4684_s0 + $0x258] sm:$0xff] }
  0x3b   :  { %v2529_v39 = vld [vmem:[%s4684_s0 + $0x1f8] sm:$0xff] }
  0x3e   :  { %439 = vperm.xlu1 %3239, %v2521_v40   ;;  %245 = vperm.xlu0 %3238, %v2495_v41  }
  0x42   :  { %121 = vperm.xlu1 %3239, %v42_v42   ;;  %578 = vperm.xlu0 %3238, %v2536_v43  }
  0x46   :  { %414 = vperm.xlu1 %3239, %v2516_v44   ;;  %275 = vperm.xlu0 %3238, %v2501_v45  }
  0x4a   :  { %96 = vperm.xlu1 %3239, %v37_v46   ;;  %608 = vperm.xlu0 %3238, %v2542_v47   ;;  %v46_v46 = vld [vmem:[%s4684_s0 + $0x90] sm:$0xff]  ;;  %v2505_v47 = vld [vmem:[%s4684_s0 + $0x138] sm:$0xff] }
  0x4e   :  { %444 = vperm.xlu1 %3239, %v2522_v48   ;;  %250 = vperm.xlu0 %3238, %v2496_v49  }
  0x52   :  { %126 = vperm.xlu1 %3239, %v43_v50   ;;  %583 = vperm.xlu0 %3238, %v2537_v51  }
  0x56   :  { %419 = vperm.xlu1 %3239, %v2517_v52   ;;  %280 = vperm.xlu0 %3238, %v2502_v53  }
  0x5a   :  { %101 = vperm.xlu1 %3239, %v38_v54   ;;  %613 = vperm.xlu0 %3238, %v2543_v55   ;;  %v2526_v55 = vld [vmem:[%s4684_s0 + $0x1e0] sm:$0xff] }
  0x5e   :  { %449 = vperm.xlu1 %3239, %v2523_v56   ;;  %255 = vperm.xlu0 %3238, %v2497_v57   ;;  %v2547_v56 = vld [vmem:[%s4684_s0 + $0x288] sm:$0xff] }
  0x62   :  { %131 = vperm.xlu1 %3239, %v44_v58   ;;  %588 = vperm.xlu0 %3238, %v2538_v59  }
  0x66   :  { %424 = vperm.xlu1 %3239, %v2518_v60   ;;  %285 = vperm.xlu0 %3238, %v2503_v61  }
  0x6a   :  { %106 = vperm.xlu1 %3239, %v39_v62   ;;  %618 = vperm.xlu0 %3238, %v2544_v63   ;;  %v2600_v62 = vld [vmem:[%s4687_s3 + $0xb8] sm:$0xff] }
  0x6e   :  { %454 = vperm.xlu1 %3239, %v2524_v0   ;;  %260 = vperm.xlu0 %3238, %v2498_v1   ;;  %v47_v1 = vld [vmem:[%s4684_s0 + $0x98] sm:$0xff] }
  0x72   :  { %136 = vperm.xlu1 %3239, %v45_v2   ;;  %593 = vperm.xlu0 %3238, %v2539_v3   ;;  %v2506_v2 = vld [vmem:[%s4684_s0 + $0x140] sm:$0xff] }
  0x76   :  { %429 = vperm.xlu1 %3239, %v2519_v4   ;;  %290 = vperm.xlu0 %3238, %v2504_v5   ;;  %v2599_v5 = vld [vmem:[%s4687_s3 + $0xb0] sm:$0xff] }
  0x7a   :  { %111 = vperm.xlu1 %3239, %v40_v6   ;;  %623 = vperm.xlu0 %3238, %v2545_v8  }
  0x7d   :  { %v380_v11 = vpop.permute.xlu1 %379  ;;  %v57_v12 = vpop.permute.xlu0 %56 }
  0x7e   :  { %459 = vperm.xlu1 %3239, %v2525_v9   ;;  %265 = vperm.xlu0 %3238, %v2499_v10   ;;  %v161_v18 = vmul.f32 %v3562_v13, %v57_v12  ;;  %v478_v22 = vmul.f32 %v3562_v13, %v380_v11  ;;  %v2598_v12 = vld [vmem:[%s4687_s3 + $0xa8] sm:$0xff] }
  0x81   :  { %v62_v16 = vpop.permute.xlu1 %61  ;;  %v211_v17 = vpop.permute.xlu0 %210 }
  0x82   :  { %v309_v19 = vmul.f32 %v3562_v13, %v211_v17  ;;  %598 = vperm.xlu0 %3238, %v2540_v14   ;;  %51 = vperm.xlu1 %3239, %v28_v15   ;;  %v162_v35 = vmul.f32 %v3562_v13, %v62_v16  ;;  %v2527_v14 = vld [vmem:[%s4684_s0 + $0x1e8] sm:$0xff]  ;;  %v48_v15 = vld [vmem:[%s4684_s0 + $0xa0] sm:$0xff] }
  0x84   :  { %v330_v23 = vmax.f32 %v161_v18, %v309_v19 }
  0x85   :  { %v549_v24 = vpop.permute.xlu1 %548  ;;  %v216_v25 = vpop.permute.xlu0 %215 }
  0x86   :  { %v499_v26 = vmax.f32 %v330_v23, %v478_v22  ;;  %v647_v27 = vmul.f32 %v3562_v13, %v549_v24  ;;  %205 = vperm.xlu0 %3238, %v2487_v20   ;;  %434 = vperm.xlu1 %3239, %v2520_v21   ;;  %v310_v32 = vmul.f32 %v3562_v13, %v216_v25  ;;  %v2597_v21 = vld [vmem:[%s4687_s3 + $0xa0] sm:$0xff]  ;;  %v2507_v24 = vld [vmem:[%s4684_s0 + $0x148] sm:$0xff]  ;;  %v2548_v25 = vld [vmem:[%s4684_s0 + $0x290] sm:$0xff] }
  0x88   :  { %v668_v31 = vmax.f32 %v499_v26, %v647_v27  ;;  %v331_v41 = vmax.f32 %v162_v35, %v310_v32  ;;  %v2595_v35 = vld [vmem:[%s4687_s3 + $0x90] sm:$0xff] }
  0x89   :  { %v67_v33 = vpop.permute.xlu1 %66  ;;  %v385_v34 = vpop.permute.xlu0 %384 }
  0x8a   :  { %v696_v36 = vadd.f32 %v3583_v28, %v668_v31  ;;  %v479_v37 = vmul.f32 %v3562_v13, %v385_v34  ;;  %628 = vperm.xlu0 %3238, %v2546_v29   ;;  %374 = vperm.xlu1 %3239, %v2508_v30   ;;  %v163_v52 = vmul.f32 %v3562_v13, %v67_v33  ;;  %v2596_v29 = vld [vmem:[%s4687_s3 + $0x98] sm:$0xff] }
  0x8c   :  { %v717_v40 = vmax.f32 %v696_v36, 0.0  ;;  %v500_v44 = vmax.f32 %v331_v41, %v479_v37  ;;  %v2528_v36 = vld [vmem:[%s4684_s0 + $0x1f0] sm:$0xff]  ;;  %v2549_v37 = vld [vmem:[%s4684_s0 + $0x298] sm:$0xff]  ;;  %s3276_s0 = smov 64  }
  0x8d   :  { %v554_v42 = vpop.permute.xlu1 %553  ;;  %v221_v43 = vpop.permute.xlu0 %220 }
  0x8e   :  { %739 = vst.msk [vmem:[#allocation2 + $0x8] sm:$0xff] %vm737_vm1, %v717_v40  ;;  %v648_v45 = vmul.f32 %v3562_v13, %v554_v42  ;;  %603 = vperm.xlu0 %3238, %v2541_v38   ;;  %543 = vperm.xlu1 %3239, %v2529_v39   ;;  %v311_v49 = vmul.f32 %v3562_v13, %v221_v43  ;;  %v2594_v43 = vld [vmem:[%s4687_s3 + $0x88] sm:$0xff] }
  0x90   :  { %v669_v48 = vmax.f32 %v500_v44, %v648_v45  ;;  %v332_v58 = vmax.f32 %v163_v52, %v311_v49 }
  0x91   :  { %v72_v50 = vpop.permute.xlu1 %71  ;;  %v390_v51 = vpop.permute.xlu0 %389 }
  0x92   :  { %v697_v53 = vadd.f32 %v3583_v28, %v669_v48  ;;  %v480_v54 = vmul.f32 %v3562_v13, %v390_v51  ;;  %141 = vperm.xlu0 %3238, %v46_v46   ;;  %295 = vperm.xlu1 %3239, %v2505_v47   ;;  %v164_v9 = vmul.f32 %v3562_v13, %v72_v50  ;;  %v2593_v46 = vld [vmem:[%s4687_s3 + $0x80] sm:$0xff] }
  0x94   :  { %v718_v57 = vmax.f32 %v697_v53, 0.0  ;;  %v501_v63 = vmax.f32 %v332_v58, %v480_v54 }
  0x95   :  { %v559_v59 = vpop.permute.xlu1 %558  ;;  %v226_v60 = vpop.permute.xlu0 %225  ;;  %v3619_v61 = vld [vmem:[#allocation2 + $0x8] sm:$0xff] }
  0x96   :  { %740 = vst.msk [vmem:[#allocation2 + $0x10] sm:$0xff] %vm737_vm1, %v718_v57  ;;  %v649_v0 = vmul.f32 %v3562_v13, %v559_v59  ;;  %464 = vperm.xlu0 %3238, %v2526_v55   ;;  %633 = vperm.xlu1 %3239, %v2547_v56   ;;  %v312_v4 = vmul.f32 %v3562_v13, %v226_v60 }
  0x97   :  { %2839 = vmatmul.mubr.msk.f32.vlgmr.msra.gmra.mxu0 %vm737_vm1, %v3619_v61 }
  0x98   :  { %v670_v3 = vmax.f32 %v501_v63, %v649_v0  ;;  %2841 = vmatprep.mubr.msk.f32.mxu0 %vm3272_vm0, %v3271_v7  ;;  %2957 = vmatpush3.msra.mxu0 %v2600_v62  ;;  %v333_v17 = vmax.f32 %v164_v9, %v312_v4 }
  0x99   :  { %v77_v6 = vpop.permute.xlu1 %76  ;;  %v395_v8 = vpop.permute.xlu0 %394  ;;  %2958 = vmatprep.subr.mxu0 %v3271_v7 }
  0x9a   :  { %v698_v10 = vadd.f32 %v3583_v28, %v670_v3  ;;  %v481_v11 = vmul.f32 %v3562_v13, %v395_v8  ;;  %146 = vperm.xlu0 %3238, %v47_v1   ;;  %300 = vperm.xlu1 %3239, %v2506_v2   ;;  %v165_v32 = vmul.f32 %v3562_v13, %v77_v6 }
  0x9b   :  { %2959 = vmatpush3.msra.mxu0 %v2599_v5 }
  0x9c   :  { %v719_v16 = vmax.f32 %v698_v10, 0.0  ;;  %2960 = vmatprep.subr.mxu0 %v3271_v7  ;;  %v502_v22 = vmax.f32 %v333_v17, %v481_v11 }
  0x9d   :  { %v564_v18 = vpop.permute.xlu1 %563  ;;  %v231_v19 = vpop.permute.xlu0 %230  ;;  %v3654_v20 = vld [vmem:[#allocation2 + $0x10] sm:$0xff]  ;;  %2961 = vmatpush3.msra.mxu0 %v2598_v12 }
  0x9e   :  { %741 = vst.msk [vmem:[#allocation2 + $0x18] sm:$0xff] %vm737_vm1, %v719_v16  ;;  %v650_v23 = vmul.f32 %v3562_v13, %v564_v18  ;;  %469 = vperm.xlu0 %3238, %v2527_v14   ;;  %151 = vperm.xlu1 %3239, %v48_v15   ;;  %v313_v27 = vmul.f32 %v3562_v13, %v231_v19 }
  0x9f   :  { %2842 = vmatmul.mubr.msk.f32.gmra.mxu0 %vm737_vm1, %v3654_v20  ;;  %2962 = vmatprep.subr.mxu0 %v3271_v7 }
  0xa0   :  { %v671_v26 = vmax.f32 %v502_v22, %v650_v23  ;;  %2844 = vmatprep.mubr.msk.f32.mxu0 %vm3272_vm0, %v3271_v7  ;;  %2963 = vmatpush3.msra.mxu0 %v2597_v21  ;;  %v334_v39 = vmax.f32 %v165_v32, %v313_v27 }
  0xa1   :  { %v82_v30 = vpop.permute.xlu1 %81  ;;  %v400_v31 = vpop.permute.xlu0 %399  ;;  %2964 = vmatprep.subr.mxu0 %v3271_v7 }
  0xa2   :  { %v699_v33 = vadd.f32 %v3583_v28, %v671_v26  ;;  %v482_v34 = vmul.f32 %v3562_v13, %v400_v31  ;;  %305 = vperm.xlu0 %3238, %v2507_v24   ;;  %638 = vperm.xlu1 %3239, %v2548_v25   ;;  %v166_v51 = vmul.f32 %v3562_v13, %v82_v30 }
  0xa3   :  { %2965 = vmatpush3.msra.mxu0 %v2596_v29 }
  0xa4   :  { %v720_v38 = vmax.f32 %v699_v33, 0.0  ;;  %2966 = vmatprep.subr.mxu0 %v3271_v7  ;;  %v503_v44 = vmax.f32 %v334_v39, %v482_v34 }
  0xa5   :  { %v569_v40 = vpop.permute.xlu1 %568  ;;  %v236_v41 = vpop.permute.xlu0 %235  ;;  %v3690_v42 = vld [vmem:[#allocation2 + $0x18] sm:$0xff]  ;;  %2967 = vmatpush3.msra.mxu0 %v2595_v35 }
  0xa6   :  { %742 = vst.msk [vmem:[#allocation2 + $0x20] sm:$0xff] %vm737_vm1, %v720_v38  ;;  %v651_v45 = vmul.f32 %v3562_v13, %v569_v40  ;;  %474 = vperm.xlu0 %3238, %v2528_v36   ;;  %643 = vperm.xlu1 %3239, %v2549_v37   ;;  %v314_v48 = vmul.f32 %v3562_v13, %v236_v41 }
  0xa7   :  { %2845 = vmatmul.mubr.msk.f32.gmra.mxu0 %vm737_vm1, %v3690_v42  ;;  %2968 = vmatprep.subr.mxu0 %v3271_v7 }
  0xa8   :  { %v672_v47 = vmax.f32 %v503_v44, %v651_v45  ;;  %2847 = vmatprep.mubr.msk.f32.mxu0 %vm3272_vm0, %v3271_v7  ;;  %2969 = vmatpush3.msra.mxu0 %v2594_v43  ;;  %v335_v55 = vmax.f32 %v166_v51, %v314_v48 }
  0xa9   :  { %v87_v49 = vpop.permute.xlu1 %86  ;;  %v405_v50 = vpop.permute.xlu0 %404  ;;  %2970 = vmatprep.subr.mxu0 %v3271_v7 }
  0xaa   :  { %v700_v52 = vadd.f32 %v3583_v28, %v672_v47  ;;  %v483_v53 = vmul.f32 %v3562_v13, %v405_v50  ;;  %2971 = vmatpush3.msra.mxu0 %v2593_v46  ;;  %v167_v10 = vmul.f32 %v3562_v13, %v87_v49 }
  0xab   :  { %3090 = vmatprep.subr.mxu0 %v3271_v7 }
  0xac   :  { %v721_v54 = vmax.f32 %v700_v52, 0.0  ;;  %v504_v59 = vmax.f32 %v335_v55, %v483_v53 }
  0xad   :  { %v574_v56 = vpop.permute.xlu1 %573  ;;  %v241_v57 = vpop.permute.xlu0 %240  ;;  %v3711_v58 = vld [vmem:[#allocation2 + $0x20] sm:$0xff] }
  0xae   :  { %743 = vst.msk [vmem:[#allocation2 + $0x28] sm:$0xff] %vm737_vm1, %v721_v54  ;;  %v652_v60 = vmul.f32 %v3562_v13, %v574_v56  ;;  %2848 = vmatmul.mubr.msk.f32.gmra.mxu0 %vm737_vm1, %v3711_v58  ;;  %v315_v6 = vmul.f32 %v3562_v13, %v241_v57 }
  0xaf   :  { %2850 = vmatprep.mubr.msk.f32.mxu0 %vm3272_vm0, %v3271_v7 }
  0xb0   :  { %v673_v62 = vmax.f32 %v504_v59, %v652_v60  ;;  %v336_v12 = vmax.f32 %v167_v10, %v315_v6  ;;  %v783_v59 = vld [vmem:[%s4687_s3 + $0x38] sm:$0xff]  ;;  %v781_v6 = vld [vmem:[%s4687_s3 + $0x28] sm:$0xff] }
  0xb1   :  { %v271_v63 = vpop.permute.xlu1 %270  ;;  %v117_v0 = vpop.permute.xlu0 %116 }
  0xb2   :  { %v701_v1 = vadd.f32 %v3583_v28, %v673_v62  ;;  %v321_v19 = vmul.f32 %v3562_v13, %v271_v63  ;;  %v173_v21 = vmul.f32 %v3562_v13, %v117_v0 }
  0xb4   :  { %v722_v2 = vmax.f32 %v701_v1, 0.0  ;;  %v342_v27 = vmax.f32 %v173_v21, %v321_v19 }
  0xb5   :  { %v92_v3 = vpop.permute.xlu1 %91  ;;  %v410_v4 = vpop.permute.xlu0 %409  ;;  %v3720_v5 = vld [vmem:[#allocation2 + $0x28] sm:$0xff] }
  0xb6   :  { %744 = vst.msk [vmem:[#allocation2 + $0x30] sm:$0xff] %vm737_vm1, %v722_v2  ;;  %2851 = vmatmul.mubr.msk.f32.gmra.mxu0 %vm737_vm1, %v3720_v5  ;;  %v484_v11 = vmul.f32 %v3562_v13, %v410_v4  ;;  %v168_v38 = vmul.f32 %v3562_v13, %v92_v3  ;;  %v782_v2 = vld [vmem:[%s4687_s3 + $0x30] sm:$0xff] }
  0xb7   :  { %2853 = vmatprep.mubr.msk.f32.mxu0 %vm3272_vm0, %v3271_v7 }
  0xb8   :  { %v505_v17 = vmax.f32 %v336_v12, %v484_v11 }
  0xb9   :  { %v440_v8 = vpop.permute.xlu1 %439  ;;  %v246_v9 = vpop.permute.xlu0 %245 }
  0xba   :  { %v490_v25 = vmul.f32 %v3562_v13, %v440_v8  ;;  %v316_v34 = vmul.f32 %v3562_v13, %v246_v9 }
  0xbc   :  { %v511_v32 = vmax.f32 %v342_v27, %v490_v25  ;;  %v337_v41 = vmax.f32 %v168_v38, %v316_v34  ;;  %v778_v25 = vld [vmem:[%s4687_s3 + $0x10] sm:$0xff] }
  0xbd   :  { %v122_v14 = vpop.permute.xlu1 %121  ;;  %v579_v15 = vpop.permute.xlu0 %578  ;;  %v3730_v16 = vld [vmem:[#allocation2 + $0x30] sm:$0xff] }
  0xbe   :  { %v653_v18 = vmul.f32 %v3562_v13, %v579_v15  ;;  %2854 = vmatmul.mubr.msk.f32.gmra.mxu0 %vm737_vm1, %v3730_v16  ;;  %v174_v53 = vmul.f32 %v3562_v13, %v122_v14  ;;  %v780_v14 = vld [vmem:[%s4687_s3 + $0x20] sm:$0xff] }
  0xbf   :  { %2856 = vmatprep.mubr.msk.f32.mxu0 %vm3272_vm0, %v3271_v7 }
  0xc0   :  { %v674_v22 = vmax.f32 %v505_v17, %v653_v18  ;;  %v779_v18 = vld [vmem:[%s4687_s3 + $0x18] sm:$0xff] }
  0xc1   :  { %v415_v23 = vpop.permute.xlu1 %414  ;;  %v276_v24 = vpop.permute.xlu0 %275 }
  0xc2   :  { %v702_v26 = vadd.f32 %v3583_v28, %v674_v22  ;;  %v485_v39 = vmul.f32 %v3562_v13, %v415_v23  ;;  %v322_v49 = vmul.f32 %v3562_v13, %v276_v24 }
  0xc4   :  { %v723_v29 = vmax.f32 %v702_v26, 0.0  ;;  %v506_v47 = vmax.f32 %v337_v41, %v485_v39  ;;  %v343_v56 = vmax.f32 %v174_v53, %v322_v49 }
  0xc5   :  { %v97_v30 = vpop.permute.xlu1 %96  ;;  %v609_v31 = vpop.permute.xlu0 %608 }
  0xc6   :  { %745 = vst.msk [vmem:[#allocation2 + $0x38] sm:$0xff] %vm737_vm1, %v723_v29  ;;  %v659_v33 = vmul.f32 %v3562_v13, %v609_v31  ;;  %v169_v10 = vmul.f32 %v3562_v13, %v97_v30  ;;  %v777_v29 = vld [vmem:[%s4687_s3 + $0x8] sm:$0xff] }
  0xc8   :  { %v680_v35 = vmax.f32 %v511_v32, %v659_v33 }
  0xc9   :  { %v445_v36 = vpop.permute.xlu1 %444  ;;  %v251_v37 = vpop.permute.xlu0 %250 }
  0xca   :  { %v708_v40 = vadd.f32 %v3583_v28, %v680_v35  ;;  %v491_v54 = vmul.f32 %v3562_v13, %v445_v36  ;;  %v317_v3 = vmul.f32 %v3562_v13, %v251_v37  ;;  %v776_v35 = vld [vmem:[%s4687_s3] sm:$0xff] }
  0xcc   :  { %v729_v43 = vmax.f32 %v708_v40, 0.0  ;;  %v512_v0 = vmax.f32 %v343_v56, %v491_v54  ;;  %v338_v15 = vmax.f32 %v169_v10, %v317_v3 }
  0xcd   :  { %v3747_v44 = vpop.permute.xlu1 %126  ;;  %v584_v45 = vpop.permute.xlu0 %583  ;;  %v3749_v46 = vld [vmem:[#allocation2 + $0x38] sm:$0xff] }
  0xce   :  { %751 = vst.msk [vmem:[#allocation2 + $0x68] sm:$0xff] %vm737_vm1, %v729_v43  ;;  %v654_v48 = vmul.f32 %v3562_v13, %v584_v45  ;;  %2857 = vmatmul.mubr.msk.f32.gmra.mxu0 %vm737_vm1, %v3749_v46  ;;  %v175_v32 = vmul.f32 %v3562_v13, %v3747_v44 }
  0xcf   :  { %2859 = vmatprep.mubr.msk.f32.mxu0 %vm3272_vm0, %v3271_v7 }
  0xd0   :  { %v675_v50 = vmax.f32 %v506_v47, %v654_v48 }
  0xd1   :  { %v420_v51 = vpop.permute.xlu1 %419  ;;  %v281_v52 = vpop.permute.xlu0 %280 }
  0xd2   :  { %v703_v55 = vadd.f32 %v3583_v28, %v675_v50  ;;  %v486_v11 = vmul.f32 %v3562_v13, %v420_v51  ;;  %v323_v26 = vmul.f32 %v3562_v13, %v281_v52 }
  0xd4   :  { %v724_v57 = vmax.f32 %v703_v55, 0.0  ;;  %v507_v23 = vmax.f32 %v338_v15, %v486_v11  ;;  %v344_v36 = vmax.f32 %v175_v32, %v323_v26 }
  0xd5   :  { %v3764_v60 = vpop.permute.xlu1 %101  ;;  %v614_v62 = vpop.permute.xlu0 %613  ;;  %v3766_v63 = vld [vmem:[#allocation2 + $0x68] sm:$0xff] }
  0xd6   :  { %746 = vst.msk [vmem:[#allocation2 + $0x40] sm:$0xff] %vm737_vm1, %v724_v57  ;;  %v660_v1 = vmul.f32 %v3562_v13, %v614_v62  ;;  %2875 = vmatmul.mubr.msk.f32.vlgmr.msra.gmra.mxu1 %vm737_vm1, %v3766_v63  ;;  %v170_v49 = vmul.f32 %v3562_v13, %v3764_v60 }
  0xd7   :  { %2877 = vmatprep.mubr.msk.f32.mxu1 %vm3272_vm0, %v3271_v7  ;;  %2890 = vmatpush3.msra.mxu1 %v783_v59 }
  0xd8   :  { %v681_v4 = vmax.f32 %v512_v0, %v660_v1  ;;  %2891 = vmatprep.subr.mxu1 %v3271_v7 }
  0xd9   :  { %v450_v8 = vpop.permute.xlu1 %449  ;;  %v256_v9 = vpop.permute.xlu0 %255  ;;  %2892 = vmatpush3.msra.mxu1 %v782_v2 }
  0xda   :  { %v709_v12 = vadd.f32 %v3583_v28, %v681_v4  ;;  %2893 = vmatprep.subr.mxu1 %v3271_v7  ;;  %v492_v33 = vmul.f32 %v3562_v13, %v450_v8  ;;  %v318_v44 = vmul.f32 %v3562_v13, %v256_v9 }
  0xdb   :  { %2894 = vmatpush3.msra.mxu1 %v781_v6 }
  0xdc   :  { %v730_v17 = vmax.f32 %v709_v12, 0.0  ;;  %2895 = vmatprep.subr.mxu1 %v3271_v7  ;;  %v513_v41 = vmax.f32 %v344_v36, %v492_v33  ;;  %v339_v52 = vmax.f32 %v170_v49, %v318_v44 }
  0xdd   :  { %v132_v19 = vpop.permute.xlu1 %131  ;;  %v589_v21 = vpop.permute.xlu0 %588  ;;  %v3793_v22 = vld [vmem:[#allocation2 + $0x40] sm:$0xff]  ;;  %2896 = vmatpush3.msra.mxu1 %v780_v14 }
  0xde   :  { %752 = vst.msk [vmem:[#allocation2 + $0x70] sm:$0xff] %vm737_vm1, %v730_v17  ;;  %v655_v24 = vmul.f32 %v3562_v13, %v589_v21  ;;  %2860 = vmatmul.mubr.msk.f32.gmra.mxu0 %vm737_vm1, %v3793_v22  ;;  %2897 = vmatprep.subr.mxu1 %v3271_v7  ;;  %v176_v2 = vmul.f32 %v3562_v13, %v132_v19 }
  0xdf   :  { %2862 = vmatprep.mubr.msk.f32.mxu0 %vm3272_vm0, %v3271_v7  ;;  %2898 = vmatpush3.msra.mxu1 %v779_v18 }
  0xe0   :  { %v676_v27 = vmax.f32 %v507_v23, %v655_v24  ;;  %2899 = vmatprep.subr.mxu1 %v3271_v7 }
  0xe1   :  { %v425_v30 = vpop.permute.xlu1 %424  ;;  %v286_v31 = vpop.permute.xlu0 %285  ;;  %2900 = vmatpush3.msra.mxu1 %v778_v25 }
  0xe2   :  { %v704_v34 = vadd.f32 %v3583_v28, %v676_v27  ;;  %2901 = vmatprep.subr.mxu1 %v3271_v7  ;;  %v487_v50 = vmul.f32 %v3562_v13, %v425_v30  ;;  %v324_v60 = vmul.f32 %v3562_v13, %v286_v31 }
  0xe3   :  { %2902 = vmatpush3.msra.mxu1 %v777_v29 }
  0xe4   :  { %v725_v37 = vmax.f32 %v704_v34, 0.0  ;;  %2903 = vmatprep.subr.mxu1 %v3271_v7  ;;  %v508_v57 = vmax.f32 %v339_v52, %v487_v50  ;;  %v345_v6 = vmax.f32 %v176_v2, %v324_v60 }
  0xe5   :  { %v107_v38 = vpop.permute.xlu1 %106  ;;  %v619_v39 = vpop.permute.xlu0 %618  ;;  %v3819_v40 = vld [vmem:[#allocation2 + $0x70] sm:$0xff]  ;;  %2904 = vmatpush3.msra.mxu1 %v776_v35 }
  0xe6   :  { %747 = vst.msk [vmem:[#allocation2 + $0x48] sm:$0xff] %vm737_vm1, %v725_v37  ;;  %v661_v43 = vmul.f32 %v3562_v13, %v619_v39  ;;  %2878 = vmatmul.mubr.msk.f32.gmra.mxu1 %vm737_vm1, %v3819_v40  ;;  %3023 = vmatprep.subr.mxu1 %v3271_v7  ;;  %v171_v21 = vmul.f32 %v3562_v13, %v107_v38 }
  0xe7   :  { %2880 = vmatprep.mubr.msk.f32.mxu1 %vm3272_vm0, %v3271_v7 }
  0xe8   :  { %v682_v45 = vmax.f32 %v513_v41, %v661_v43 }
  0xe9   :  { %v455_v47 = vpop.permute.xlu1 %454  ;;  %v261_v48 = vpop.permute.xlu0 %260 }
  0xea   :  { %v710_v51 = vadd.f32 %v3583_v28, %v682_v45  ;;  %v493_v3 = vmul.f32 %v3562_v13, %v455_v47  ;;  %v319_v15 = vmul.f32 %v3562_v13, %v261_v48 }
  0xec   :  { %v731_v53 = vmax.f32 %v710_v51, 0.0  ;;  %v514_v12 = vmax.f32 %v345_v6, %v493_v3  ;;  %v340_v25 = vmax.f32 %v171_v21, %v319_v15 }
  0xed   :  { %v137_v54 = vpop.permute.xlu1 %136  ;;  %v594_v55 = vpop.permute.xlu0 %593  ;;  %v3833_v56 = vld [vmem:[#allocation2 + $0x48] sm:$0xff] }
  0xee   :  { %753 = vst.msk [vmem:[#allocation2 + $0x78] sm:$0xff] %vm737_vm1, %v731_v53  ;;  %v656_v59 = vmul.f32 %v3562_v13, %v594_v55  ;;  %2863 = vmatmul.mubr.msk.f32.gmra.mxu0 %vm737_vm1, %v3833_v56  ;;  %v177_v37 = vmul.f32 %v3562_v13, %v137_v54 }
  0xef   :  { %2865 = vmatprep.mubr.msk.f32.mxu0 %vm3272_vm0, %v3271_v7 }
  0xf0   :  { %v677_v62 = vmax.f32 %v508_v57, %v656_v59 }
  0xf1   :  { %v430_v0 = vpop.permute.xlu1 %429  ;;  %v291_v1 = vpop.permute.xlu0 %290 }
  0xf2   :  { %v705_v4 = vadd.f32 %v3583_v28, %v677_v62  ;;  %v488_v23 = vmul.f32 %v3562_v13, %v430_v0  ;;  %v325_v33 = vmul.f32 %v3562_v13, %v291_v1 }
  0xf4   :  { %v726_v8 = vmax.f32 %v705_v4, 0.0  ;;  %v509_v31 = vmax.f32 %v340_v25, %v488_v23  ;;  %v346_v43 = vmax.f32 %v177_v37, %v325_v33 }
  0xf5   :  { %v112_v9 = vpop.permute.xlu1 %111  ;;  %v624_v10 = vpop.permute.xlu0 %623  ;;  %v3845_v11 = vld [vmem:[#allocation2 + $0x78] sm:$0xff] }
  0xf6   :  { %748 = vst.msk [vmem:[#allocation2 + $0x50] sm:$0xff] %vm737_vm1, %v726_v8  ;;  %v662_v14 = vmul.f32 %v3562_v13, %v624_v10  ;;  %2881 = vmatmul.mubr.msk.f32.gmra.mxu1 %vm737_vm1, %v3845_v11  ;;  %v172_v47 = vmul.f32 %v3562_v13, %v112_v9 }
  0xf7   :  { %2883 = vmatprep.mubr.msk.f32.mxu1 %vm3272_vm0, %v3271_v7 }
  0xf8   :  { %v683_v17 = vmax.f32 %v514_v12, %v662_v14 }
  0xf9   :  { %v460_v18 = vpop.permute.xlu1 %459  ;;  %v266_v19 = vpop.permute.xlu0 %265 }
  0xfa   :  { %v711_v24 = vadd.f32 %v3583_v28, %v683_v17  ;;  %v494_v38 = vmul.f32 %v3562_v13, %v460_v18  ;;  %v320_v41 = vmul.f32 %v3562_v13, %v266_v19 }
  0xfc   :  { %v732_v26 = vmax.f32 %v711_v24, 0.0  ;;  %v515_v52 = vmax.f32 %v346_v43, %v494_v38  ;;  %v341_v57 = vmax.f32 %v172_v47, %v320_v41  ;;  %v2625_v41 = vld [vmem:[%s4687_s3 + $0xf8] sm:$0xff] }
  0xfd   :  { %v599_v27 = vpop.permute.xlu0 %598  ;;  %v52_v29 = vpop.permute.xlu1 %51  ;;  %v3857_v30 = vld [vmem:[#allocation2 + $0x50] sm:$0xff] }
  0xfe   :  { %754 = vst.msk [vmem:[#allocation2 + $0x80] sm:$0xff] %vm737_vm1, %v732_v26  ;;  %v657_v32 = vmul.f32 %v3562_v13, %v599_v27  ;;  %2866 = vmatmul.mubr.msk.f32.gmra.mxu0 %vm737_vm1, %v3857_v30  ;;  %v160_v53 = vmul.f32 %v3562_v13, %v52_v29 }
  0xff   :  { %2868 = vmatprep.mubr.msk.f32.mxu0 %vm3272_vm0, %v3271_v7 }
 0x100   :  { %v678_v34 = vmax.f32 %v509_v31, %v657_v32 }
 0x101   :  { %v206_v35 = vpop.permute.xlu0 %205  ;;  %v435_v36 = vpop.permute.xlu1 %434 }
 0x102   :  { %v706_v39 = vadd.f32 %v3583_v28, %v678_v34  ;;  %v308_v45 = vmul.f32 %v3562_v13, %v206_v35  ;;  %v489_v48 = vmul.f32 %v3562_v13, %v435_v36 }
 0x104   :  { %v727_v44 = vmax.f32 %v706_v39, 0.0  ;;  %v329_v59 = vmax.f32 %v160_v53, %v308_v45  ;;  %v510_v62 = vmax.f32 %v341_v57, %v489_v48  ;;  %v2650_v53 = vld [vmem:[%s4687_s3 + $0x138] sm:$0xff] }
 0x105   :  { %v629_v49 = vpop.permute.xlu0 %628  ;;  %v375_v50 = vpop.permute.xlu1 %374  ;;  %v3873_v51 = vld [vmem:[#allocation2 + $0x80] sm:$0xff] }
 0x106   :  { %749 = vst.msk [vmem:[#allocation2 + $0x58] sm:$0xff] %vm737_vm1, %v727_v44  ;;  %v663_v54 = vmul.f32 %v3562_v13, %v629_v49  ;;  %v477_v55 = vmul.f32 %v3562_v13, %v375_v50  ;;  %2884 = vmatmul.mubr.msk.f32.gmra.mxu1 %vm737_vm1, %v3873_v51  ;;  %v2624_v50 = vld [vmem:[%s4687_s3 + $0xf0] sm:$0xff] }
 0x107   :  { %2886 = vmatprep.mubr.msk.f32.mxu1 %vm3272_vm0, %v3271_v7 }
 0x108   :  { %v684_v60 = vmax.f32 %v515_v52, %v663_v54  ;;  %v498_v3 = vmax.f32 %v329_v59, %v477_v55 }
 0x109   :  { %v604_v0 = vpop.permute.xlu0 %603  ;;  %v544_v1 = vpop.permute.xlu1 %543 }
 0x10a   :  { %v712_v2 = vadd.f32 %v3583_v28, %v684_v60  ;;  %v658_v4 = vmul.f32 %v3562_v13, %v604_v0  ;;  %v646_v6 = vmul.f32 %v3562_v13, %v544_v1 }
 0x10c   :  { %v733_v8 = vmax.f32 %v712_v2, 0.0  ;;  %v679_v9 = vmax.f32 %v510_v62, %v658_v4  ;;  %v667_v10 = vmax.f32 %v498_v3, %v646_v6  ;;  %v2649_v62 = vld [vmem:[%s4687_s3 + $0x130] sm:$0xff]  ;;  %v2623_v3 = vld [vmem:[%s4687_s3 + $0xe8] sm:$0xff] }
 0x10d   :  { %v142_v12 = vpop.permute.xlu0 %141  ;;  %v296_v14 = vpop.permute.xlu1 %295  ;;  %v3886_v15 = vld [vmem:[#allocation2 + $0x58] sm:$0xff] }
 0x10e   :  { %755 = vst.msk [vmem:[#allocation2 + $0x88] sm:$0xff] %vm737_vm1, %v733_v8  ;;  %v707_v17 = vadd.f32 %v3583_v28, %v679_v9  ;;  %v695_v18 = vadd.f32 %v3583_v28, %v667_v10  ;;  %v178_v19 = vmul.f32 %v3562_v13, %v142_v12  ;;  %v326_v21 = vmul.f32 %v3562_v13, %v296_v14  ;;  %v2648_v9 = vld [vmem:[%s4687_s3 + $0x128] sm:$0xff] }
 0x10f   :  { %2869 = vmatmul.mubr.msk.f32.gmra.mxu0 %vm737_vm1, %v3886_v15 }
 0x110   :  { %2871 = vmatprep.mubr.msk.f32.mxu0 %vm3272_vm0, %v3271_v7  ;;  %v728_v23 = vmax.f32 %v707_v17, 0.0  ;;  %v716_v24 = vmax.f32 %v695_v18, 0.0  ;;  %v347_v27 = vmax.f32 %v178_v19, %v326_v21  ;;  %v2621_v19 = vld [vmem:[%s4687_s3 + $0xd8] sm:$0xff] }
 0x111   :  { %v465_v25 = vpop.permute.xlu0 %464  ;;  %v634_v26 = vpop.permute.xlu1 %633 }
 0x112   :  { %750 = vst.msk [vmem:[#allocation2 + $0x60] sm:$0xff] %vm737_vm1, %v728_v23  ;;  %738 = vst.msk [vmem:[#allocation2] sm:$0xff] %vm737_vm1, %v716_v24  ;;  %v495_v29 = vmul.f32 %v3562_v13, %v465_v25  ;;  %v664_v32 = vmul.f32 %v3562_v13, %v634_v26  ;;  %v2620_v23 = vld [vmem:[%s4687_s3 + $0xd0] sm:$0xff]  ;;  %v2619_v25 = vld [vmem:[%s4687_s3 + $0xc8] sm:$0xff] }
 0x113   :  { %v2645_v24 = vld [vmem:[%s4687_s3 + $0x110] sm:$0xff]  ;;  %v2644_v26 = vld [vmem:[%s4687_s3 + $0x108] sm:$0xff] }
 0x114   :  { %v516_v31 = vmax.f32 %v347_v27, %v495_v29  ;;  %v2618_v27 = vld [vmem:[%s4687_s3 + $0xc0] sm:$0xff] }
 0x115   :  { %v147_v33 = vpop.permute.xlu0 %146  ;;  %v301_v34 = vpop.permute.xlu1 %300  ;;  %v3901_v35 = vld [vmem:[#allocation2 + $0x88] sm:$0xff]  ;;  %v2643_v29 = vld [vmem:[%s4687_s3 + $0x100] sm:$0xff] }
 0x116   :  { %v685_v36 = vmax.f32 %v516_v31, %v664_v32  ;;  %2887 = vmatmul.mubr.msk.f32.gmra.mxu1 %vm737_vm1, %v3901_v35  ;;  %v179_v38 = vmul.f32 %v3562_v13, %v147_v33  ;;  %v327_v39 = vmul.f32 %v3562_v13, %v301_v34 }
 0x117   :  { %2905 = vmatprep.mubr.msk.f32.mxu1 %vm3272_vm0, %v3271_v7 }
 0x118   :  { %v713_v37 = vadd.f32 %v3583_v28, %v685_v36  ;;  %v348_v52 = vmax.f32 %v179_v38, %v327_v39 }
 0x119   :  { %v470_v43 = vpop.permute.xlu0 %469  ;;  %v152_v44 = vpop.permute.xlu1 %151  ;;  %v3913_v45 = vld [vmem:[#allocation2 + $0x60] sm:$0xff] }
 0x11a   :  { %v759_v47 = vld [vmem:[#allocation2] sm:$0xff]  ;;  %v734_v48 = vmax.f32 %v713_v37, 0.0  ;;  %v496_v49 = vmul.f32 %v3562_v13, %v470_v43  ;;  %2872 = vmatmul.mubr.msk.f32.gmra.mxu0 %vm737_vm1, %v3913_v45  ;;  %v180_v0 = vmul.f32 %v3562_v13, %v152_v44 }
 0x11b   :  { %2906 = vmatmul.mubr.msk.f32.vlgmr.msra.gmra.mxu1 %vm737_vm1, %v759_v47  ;;  %2972 = vmatprep.mubr.msk.f32.mxu0 %vm3272_vm0, %v3271_v7 }
 0x11c   :  { %3024 = vmatpush3.msra.mxu1 %v2625_v41  ;;  %2908 = vmatprep.mubr.msk.f32.mxu1 %vm3272_vm0, %v3271_v7  ;;  %756 = vst.msk [vmem:[#allocation2 + $0x90] sm:$0xff] %vm737_vm1, %v734_v48  ;;  %v517_v57 = vmax.f32 %v348_v52, %v496_v49 }
 0x11d   :  { %3025 = vmatprep.subr.mxu1 %v3271_v7  ;;  %v306_v54 = vpop.permute.xlu0 %305  ;;  %v639_v55 = vpop.permute.xlu1 %638 }
 0x11e   :  { %3026 = vmatpush3.msra.mxu1 %v2624_v50  ;;  %v328_v59 = vmul.f32 %v3562_v13, %v306_v54  ;;  %v665_v60 = vmul.f32 %v3562_v13, %v639_v55  ;;  %2973 = vmatmul.mubr.msk.f32.vlgmr.msra.gmra.mxu0 %vm737_vm1, %v3654_v20 }
 0x11f   :  { %2909 = vmatmul.mubr.msk.f32.gmra.mxu1 %vm737_vm1, %v3619_v61  ;;  %3091 = vmatpush3.msra.mxu0 %v2650_v53 }
 0x120   :  { %2911 = vmatprep.mubr.msk.f32.mxu1 %vm3272_vm0, %v3271_v7  ;;  %v686_v1 = vmax.f32 %v517_v57, %v665_v60  ;;  %2975 = vmatprep.mubr.msk.f32.mxu0 %vm3272_vm0, %v3271_v7  ;;  %v349_v4 = vmax.f32 %v180_v0, %v328_v59 }
 0x121   :  { %3092 = vmatprep.subr.mxu0 %v3271_v7  ;;  %v475_v61 = vpop.permute.xlu0 %474  ;;  %v644_v2 = vpop.permute.xlu1 %643  ;;  %3027 = vmatprep.subr.mxu1 %v3271_v7 }
 0x122   :  { %3093 = vmatpush3.msra.mxu0 %v2649_v62  ;;  %v714_v6 = vadd.f32 %v3583_v28, %v686_v1  ;;  %v497_v8 = vmul.f32 %v3562_v13, %v475_v61  ;;  %v666_v14 = vmul.f32 %v3562_v13, %v644_v2  ;;  %3028 = vmatpush3.msra.mxu1 %v2623_v3  ;;  %v2647_v13 = vld [vmem:[%s4687_s3 + $0x120] sm:$0xff] }
 0x123   :  { %2912 = vmatmul.mubr.msk.f32.gmra.mxu1 %vm737_vm1, %v3654_v20  ;;  %2976 = vmatmul.mubr.msk.f32.gmra.mxu0 %vm737_vm1, %v3690_v42  ;;  %v2622_v20 = vld [vmem:[%s4687_s3 + $0xe0] sm:$0xff]  ;;  %v4123_v33 = vld [vmem:[#allocation2 + $0x90] sm:$0xff] }
 0x124   :  { %2914 = vmatprep.mubr.msk.f32.mxu1 %vm3272_vm0, %v3271_v7  ;;  %2978 = vmatprep.mubr.msk.f32.mxu0 %vm3272_vm0, %v3271_v7  ;;  %v735_v10 = vmax.f32 %v714_v6, 0.0  ;;  %v518_v12 = vmax.f32 %v349_v4, %v497_v8 }
 0x125   :  { %3094 = vmatprep.subr.mxu0 %v3271_v7  ;;  %3029 = vmatprep.subr.mxu1 %v3271_v7 }
 0x126   :  { %3095 = vmatpush3.msra.mxu0 %v2648_v9  ;;  %757 = vst.msk [vmem:[#allocation2 + $0x98] sm:$0xff] %vm737_vm1, %v735_v10  ;;  %v687_v17 = vmax.f32 %v518_v12, %v666_v14  ;;  %3030 = vmatpush3.msra.mxu1 %v2622_v20 }
 0x127   :  { %2915 = vmatmul.mubr.msk.f32.gmra.mxu1 %vm737_vm1, %v3690_v42  ;;  %2979 = vmatmul.mubr.msk.f32.gmra.mxu0 %vm737_vm1, %v3711_v58 }
 0x128   :  { %2917 = vmatprep.mubr.msk.f32.mxu1 %vm3272_vm0, %v3271_v7  ;;  %2981 = vmatprep.mubr.msk.f32.mxu0 %vm3272_vm0, %v3271_v7  ;;  %v715_v18 = vadd.f32 %v3583_v28, %v687_v17  ;;  %v2646_v28 = vld [vmem:[%s4687_s3 + $0x118] sm:$0xff]  ;;  %s3273_s3 = smov 112  }
 0x129   :  { %3096 = vmatprep.subr.mxu0 %v3271_v7  ;;  %3031 = vmatprep.subr.mxu1 %v3271_v7 }
 0x12a   :  { %3097 = vmatpush3.msra.mxu0 %v2647_v13  ;;  %v736_v21 = vmax.f32 %v715_v18, 0.0  ;;  %3032 = vmatpush3.msra.mxu1 %v2621_v19 }
 0x12b   :  { %2918 = vmatmul.mubr.msk.f32.gmra.mxu1 %vm737_vm1, %v3711_v58  ;;  %2982 = vmatmul.mubr.msk.f32.gmra.mxu0 %vm737_vm1, %v3720_v5 }
 0x12c   :  { %2920 = vmatprep.mubr.msk.f32.mxu1 %vm3272_vm0, %v3271_v7  ;;  %2984 = vmatprep.mubr.msk.f32.mxu0 %vm3272_vm0, %v3271_v7  ;;  %758 = vst.msk [vmem:[#allocation2 + $0xa0] sm:$0xff] %vm737_vm1, %v736_v21 }
 0x12d   :  { %3098 = vmatprep.subr.mxu0 %v3271_v7  ;;  %3033 = vmatprep.subr.mxu1 %v3271_v7 }
 0x12e   :  { %3099 = vmatpush3.msra.mxu0 %v2646_v28  ;;  %3034 = vmatpush3.msra.mxu1 %v2620_v23 }
 0x12f   :  { %2921 = vmatmul.mubr.msk.f32.gmra.mxu1 %vm737_vm1, %v3720_v5  ;;  %2985 = vmatmul.mubr.msk.f32.gmra.mxu0 %vm737_vm1, %v3730_v16 }
 0x130   :  { %2923 = vmatprep.mubr.msk.f32.mxu1 %vm3272_vm0, %v3271_v7  ;;  %2987 = vmatprep.mubr.msk.f32.mxu0 %vm3272_vm0, %v3271_v7 }
 0x131   :  { %3100 = vmatprep.subr.mxu0 %v3271_v7  ;;  %3035 = vmatprep.subr.mxu1 %v3271_v7 }
 0x132   :  { %3101 = vmatpush3.msra.mxu0 %v2645_v24  ;;  %3036 = vmatpush3.msra.mxu1 %v2619_v25 }
 0x133   :  { %2924 = vmatmul.mubr.msk.f32.gmra.mxu1 %vm737_vm1, %v3730_v16  ;;  %2988 = vmatmul.mubr.msk.f32.gmra.mxu0 %vm737_vm1, %v3749_v46  ;;  %v1634_v38 = vld [vmem:[#allocation2 + $0xa0] sm:$0xff] }
 0x134   :  { %2926 = vmatprep.mubr.msk.f32.mxu1 %vm3272_vm0, %v3271_v7  ;;  %2990 = vmatprep.mubr.msk.f32.mxu0 %vm3272_vm0, %v3271_v7 }
 0x135   :  { %3102 = vmatprep.subr.mxu0 %v3271_v7  ;;  %3037 = vmatprep.subr.mxu1 %v3271_v7 }
 0x136   :  { %3103 = vmatpush3.msra.mxu0 %v2644_v26  ;;  %3038 = vmatpush3.msra.mxu1 %v2618_v27 }
 0x137   :  { %2927 = vmatmul.mubr.msk.f32.gmra.mxu1 %vm737_vm1, %v3749_v46  ;;  %2991 = vmatmul.mubr.msk.f32.gmra.mxu0 %vm737_vm1, %v3793_v22 }
 0x138   :  { %2929 = vmatprep.mubr.msk.f32.mxu1 %vm3272_vm0, %v3271_v7  ;;  %2993 = vmatprep.mubr.msk.f32.mxu0 %vm3272_vm0, %v3271_v7 }
 0x139   :  { %3104 = vmatprep.subr.mxu0 %v3271_v7  ;;  %3157 = vmatprep.subr.mxu1 %v3271_v7 }
 0x13a   :  { %3105 = vmatpush3.msra.mxu0 %v2643_v29 }
 0x13b   :  { %2930 = vmatmul.mubr.msk.f32.gmra.mxu1 %vm737_vm1, %v3793_v22  ;;  %2994 = vmatmul.mubr.msk.f32.gmra.mxu0 %vm737_vm1, %v3833_v56 }
 0x13c   :  { %2932 = vmatprep.mubr.msk.f32.mxu1 %vm3272_vm0, %v3271_v7  ;;  %2996 = vmatprep.mubr.msk.f32.mxu0 %vm3272_vm0, %v3271_v7 }
 0x13f   :  { %2933 = vmatmul.mubr.msk.f32.gmra.mxu1 %vm737_vm1, %v3833_v56  ;;  %2997 = vmatmul.mubr.msk.f32.gmra.mxu0 %vm737_vm1, %v3857_v30 }
 0x140   :  { %2935 = vmatprep.mubr.msk.f32.mxu1 %vm3272_vm0, %v3271_v7  ;;  %2999 = vmatprep.mubr.msk.f32.mxu0 %vm3272_vm0, %v3271_v7 }
 0x143   :  { %2936 = vmatmul.mubr.msk.f32.gmra.mxu1 %vm737_vm1, %v3857_v30  ;;  %3000 = vmatmul.mubr.msk.f32.gmra.mxu0 %vm737_vm1, %v3886_v15 }
 0x144   :  { %2938 = vmatprep.mubr.msk.f32.mxu1 %vm3272_vm0, %v3271_v7  ;;  %3002 = vmatprep.mubr.msk.f32.mxu0 %vm3272_vm0, %v3271_v7 }
 0x147   :  { %2939 = vmatmul.mubr.msk.f32.gmra.mxu1 %vm737_vm1, %v3886_v15  ;;  %3003 = vmatmul.mubr.msk.f32.gmra.mxu0 %vm737_vm1, %v3913_v45 }
 0x148   :  { %2941 = vmatprep.mubr.msk.f32.mxu1 %vm3272_vm0, %v3271_v7  ;;  %3005 = vmatprep.mubr.msk.f32.mxu0 %vm3272_vm0, %v3271_v7 }
 0x14b   :  { %2942 = vmatmul.mubr.msk.f32.gmra.mxu1 %vm737_vm1, %v3913_v45  ;;  %3006 = vmatmul.mubr.msk.f32.gmra.mxu0 %vm737_vm1, %v3766_v63 }
 0x14c   :  { %2944 = vmatprep.mubr.msk.f32.mxu1 %vm3272_vm0, %v3271_v7  ;;  %3008 = vmatprep.mubr.msk.f32.mxu0 %vm3272_vm0, %v3271_v7 }
 0x14f   :  { %2945 = vmatmul.mubr.msk.f32.gmra.mxu1 %vm737_vm1, %v3766_v63  ;;  %3009 = vmatmul.mubr.msk.f32.gmra.mxu0 %vm737_vm1, %v3819_v40 }
 0x150   :  { %2947 = vmatprep.mubr.msk.f32.mxu1 %vm3272_vm0, %v3271_v7  ;;  %3011 = vmatprep.mubr.msk.f32.mxu0 %vm3272_vm0, %v3271_v7 }
 0x153   :  { %2948 = vmatmul.mubr.msk.f32.gmra.mxu1 %vm737_vm1, %v3819_v40  ;;  %3012 = vmatmul.mubr.msk.f32.gmra.mxu0 %vm737_vm1, %v3845_v11 }
 0x154   :  { %2950 = vmatprep.mubr.msk.f32.mxu1 %vm3272_vm0, %v3271_v7  ;;  %3014 = vmatprep.mubr.msk.f32.mxu0 %vm3272_vm0, %v3271_v7 }
 0x157   :  { %2951 = vmatmul.mubr.msk.f32.gmra.mxu1 %vm737_vm1, %v3845_v11  ;;  %3015 = vmatmul.mubr.msk.f32.gmra.mxu0 %vm737_vm1, %v3873_v51  ;;  %v4109_v31 = vpop.f32.mrf.mxu0 }
 0x158   :  { %2953 = vmatprep.mubr.msk.f32.mxu1 %vm3272_vm0, %v3271_v7  ;;  %3017 = vmatprep.mubr.msk.f32.mxu0 %vm3272_vm0, %v3271_v7 }
 0x159   :  { %v2840_v32 = vpop.f32.mrf.mxu0 }
 0x15b   :  { %2954 = vmatmul.mubr.msk.f32.gmra.mxu1 %vm737_vm1, %v3873_v51  ;;  %3018 = vmatmul.mubr.msk.f32.gmra.mxu0 %vm737_vm1, %v3901_v35 }
 0x15c   :  { %3020 = vmatprep.mubr.msk.f32.mxu0 %vm3272_vm0, %v3271_v7  ;;  %3039 = vmatprep.mubr.msk.f32.mxu1 %vm3272_vm0, %v3271_v7 }
 0x15f   :  { %3021 = vmatmul.mubr.msk.f32.gmra.mxu0 %vm737_vm1, %v4123_v33  ;;  %3040 = vmatmul.mubr.msk.f32.vlgmr.msra.gmra.mxu1 %vm737_vm1, %v3690_v42  ;;  %v4129_v34 = vpop.f32.mrf.mxu0 }
 0x160   :  { %3042 = vmatprep.mubr.msk.f32.mxu1 %vm3272_vm0, %v3271_v7  ;;  %3106 = vmatprep.mubr.msk.f32.mxu0 %vm3272_vm0, %v3271_v7 }
 0x161   :  { %v2843_v36 = vpop.f32.mrf.mxu0 }
 0x163   :  { %3043 = vmatmul.mubr.msk.f32.gmra.mxu1 %vm737_vm1, %v3711_v58  ;;  %3107 = vmatmul.mubr.msk.f32.vlgmr.msra.gmra.mxu0 %vm737_vm1, %v3711_v58 }
 0x164   :  { %3045 = vmatprep.mubr.msk.f32.mxu1 %vm3272_vm0, %v3271_v7  ;;  %3109 = vmatprep.mubr.msk.f32.mxu0 %vm3272_vm0, %v3271_v7 }
 0x167   :  { %3046 = vmatmul.mubr.msk.f32.gmra.mxu1 %vm737_vm1, %v3720_v5  ;;  %3110 = vmatmul.mubr.msk.f32.gmra.mxu0 %vm737_vm1, %v3720_v5  ;;  %v4147_v42 = vpop.f32.mrf.mxu0 }
 0x168   :  { %3048 = vmatprep.mubr.msk.f32.mxu1 %vm3272_vm0, %v3271_v7  ;;  %3112 = vmatprep.mubr.msk.f32.mxu0 %vm3272_vm0, %v3271_v7 }
 0x169   :  { %v2846_v58 = vpop.f32.mrf.mxu0 }
 0x16b   :  { %3049 = vmatmul.mubr.msk.f32.gmra.mxu1 %vm737_vm1, %v3730_v16  ;;  %3113 = vmatmul.mubr.msk.f32.gmra.mxu0 %vm737_vm1, %v3730_v16 }
 0x16c   :  { %3051 = vmatprep.mubr.msk.f32.mxu1 %vm3272_vm0, %v3271_v7  ;;  %3115 = vmatprep.mubr.msk.f32.mxu0 %vm3272_vm0, %v3271_v7 }
 0x16e   :  { %v4161_v5 = vpop.f32.mrf.mxu0 }
 0x16f   :  { %3052 = vmatmul.mubr.msk.f32.gmra.mxu1 %vm737_vm1, %v3749_v46  ;;  %3116 = vmatmul.mubr.msk.f32.gmra.mxu0 %vm737_vm1, %v3749_v46 }
 0x170   :  { %3054 = vmatprep.mubr.msk.f32.mxu1 %vm3272_vm0, %v3271_v7  ;;  %3118 = vmatprep.mubr.msk.f32.mxu0 %vm3272_vm0, %v3271_v7  ;;  %v2849_v16 = vpop.f32.mrf.mxu0 }
 0x173   :  { %3055 = vmatmul.mubr.msk.f32.gmra.mxu1 %vm737_vm1, %v3793_v22  ;;  %3119 = vmatmul.mubr.msk.f32.gmra.mxu0 %vm737_vm1, %v3793_v22 }
 0x174   :  { %3057 = vmatprep.mubr.msk.f32.mxu1 %vm3272_vm0, %v3271_v7  ;;  %3121 = vmatprep.mubr.msk.f32.mxu0 %vm3272_vm0, %v3271_v7 }
 0x176   :  { %v4179_v46 = vpop.f32.mrf.mxu0 }
 0x177   :  { %3058 = vmatmul.mubr.msk.f32.gmra.mxu1 %vm737_vm1, %v3833_v56  ;;  %3122 = vmatmul.mubr.msk.f32.gmra.mxu0 %vm737_vm1, %v3833_v56 }
 0x178   :  { %3060 = vmatprep.mubr.msk.f32.mxu1 %vm3272_vm0, %v3271_v7  ;;  %3124 = vmatprep.mubr.msk.f32.mxu0 %vm3272_vm0, %v3271_v7  ;;  %v2852_v22 = vpop.f32.mrf.mxu0 }
 0x17b   :  { %3061 = vmatmul.mubr.msk.f32.gmra.mxu1 %vm737_vm1, %v3857_v30  ;;  %3125 = vmatmul.mubr.msk.f32.gmra.mxu0 %vm737_vm1, %v3857_v30 }
 0x17c   :  { %3063 = vmatprep.mubr.msk.f32.mxu1 %vm3272_vm0, %v3271_v7  ;;  %3127 = vmatprep.mubr.msk.f32.mxu0 %vm3272_vm0, %v3271_v7 }
 0x17e   :  { %v4197_v56 = vpop.f32.mrf.mxu0 }
 0x17f   :  { %3064 = vmatmul.mubr.msk.f32.gmra.mxu1 %vm737_vm1, %v3886_v15  ;;  %3128 = vmatmul.mubr.msk.f32.gmra.mxu0 %vm737_vm1, %v3886_v15 }
 0x180   :  { %3066 = vmatprep.mubr.msk.f32.mxu1 %vm3272_vm0, %v3271_v7  ;;  %3130 = vmatprep.mubr.msk.f32.mxu0 %vm3272_vm0, %v3271_v7  ;;  %v2855_v30 = vpop.f32.mrf.mxu0 }
 0x183   :  { %3067 = vmatmul.mubr.msk.f32.gmra.mxu1 %vm737_vm1, %v3913_v45  ;;  %3131 = vmatmul.mubr.msk.f32.gmra.mxu0 %vm737_vm1, %v3913_v45 }
 0x184   :  { %3069 = vmatprep.mubr.msk.f32.mxu1 %vm3272_vm0, %v3271_v7  ;;  %3133 = vmatprep.mubr.msk.f32.mxu0 %vm3272_vm0, %v3271_v7 }
 0x187   :  { %3070 = vmatmul.mubr.msk.f32.gmra.mxu1 %vm737_vm1, %v3766_v63  ;;  %3134 = vmatmul.mubr.msk.f32.gmra.mxu0 %vm737_vm1, %v3766_v63 }
 0x188   :  { %3072 = vmatprep.mubr.msk.f32.mxu1 %vm3272_vm0, %v3271_v7  ;;  %3136 = vmatprep.mubr.msk.f32.mxu0 %vm3272_vm0, %v3271_v7 }
 0x18b   :  { %3073 = vmatmul.mubr.msk.f32.gmra.mxu1 %vm737_vm1, %v3819_v40  ;;  %3137 = vmatmul.mubr.msk.f32.gmra.mxu0 %vm737_vm1, %v3819_v40 }
 0x18c   :  { %3075 = vmatprep.mubr.msk.f32.mxu1 %vm3272_vm0, %v3271_v7  ;;  %3139 = vmatprep.mubr.msk.f32.mxu0 %vm3272_vm0, %v3271_v7 }
 0x18e   :  { %v4231_v15 = vpop.f32.mrf.mxu0 }
 0x18f   :  { %3076 = vmatmul.mubr.msk.f32.gmra.mxu1 %vm737_vm1, %v3845_v11  ;;  %3140 = vmatmul.mubr.msk.f32.gmra.mxu0 %vm737_vm1, %v3845_v11 }
 0x190   :  { %3078 = vmatprep.mubr.msk.f32.mxu1 %vm3272_vm0, %v3271_v7  ;;  %3142 = vmatprep.mubr.msk.f32.mxu0 %vm3272_vm0, %v3271_v7  ;;  %v2858_v63 = vpop.f32.mrf.mxu0 }
 0x193   :  { %3079 = vmatmul.mubr.msk.f32.gmra.mxu1 %vm737_vm1, %v3873_v51  ;;  %3143 = vmatmul.mubr.msk.f32.gmra.mxu0 %vm737_vm1, %v3873_v51  ;;  %v1396_v51 = vld [vmem:[#allocation2 + $0x98] sm:$0xff] }
 0x194   :  { %3081 = vmatprep.mubr.msk.f32.mxu1 %vm3272_vm0, %v3271_v7  ;;  %3145 = vmatprep.mubr.msk.f32.mxu0 %vm3272_vm0, %v3271_v7 }
 0x196   :  { %v4249_v40 = vpop.f32.mrf.mxu1 }
 0x197   :  { %3082 = vmatmul.mubr.msk.f32.gmra.mxu1 %vm737_vm1, %v3901_v35  ;;  %3146 = vmatmul.mubr.msk.f32.gmra.mxu0 %vm737_vm1, %v3901_v35 }
 0x198   :  { %3084 = vmatprep.mubr.msk.f32.mxu1 %vm3272_vm0, %v3271_v7  ;;  %3148 = vmatprep.mubr.msk.f32.mxu0 %vm3272_vm0, %v3271_v7  ;;  %v2876_v11 = vpop.f32.mrf.mxu1 }
 0x19b   :  { %3085 = vmatmul.mubr.msk.f32.gmra.mxu1 %vm737_vm1, %v4123_v33  ;;  %3149 = vmatmul.mubr.msk.f32.gmra.mxu0 %vm737_vm1, %v4123_v33 }
 0x19c   :  { %3087 = vmatprep.mubr.msk.f32.mxu1 %vm3272_vm0, %v3271_v7  ;;  %3151 = vmatprep.mubr.msk.f32.mxu0 %vm3272_vm0, %v3271_v7 }
 0x19e   :  { %v946_v35 = vpop.f32.mrf.mxu0 }
 0x19f   :  { %3088 = vmatmul.mubr.msk.f32.gmra.mxu1 %vm737_vm1, %v1396_v51  ;;  %3152 = vmatmul.mubr.msk.f32.gmra.mxu0 %vm737_vm1, %v1396_v51 }
 0x1a0   :  { %3154 = vmatprep.mubr.msk.f32.mxu0 %vm3272_vm0, %v3271_v7  ;;  %3181 = vmatprep.mubr.msk.f32.mxu1 %vm3272_vm0, %v3271_v7  ;;  %v2861_v37 = vpop.f32.mrf.mxu0 }
 0x1a3   :  { %3155 = vmatmul.mubr.msk.f32.gmra.mxu0 %vm737_vm1, %v1634_v38 }
 0x1a6   :  { %v4274_v39 = vpop.f32.mrf.mxu1 }
 0x1a8   :  { %v2879_v41 = vpop.f32.mrf.mxu1 }
 0x1ae   :  { %v950_v43 = vpop.f32.mrf.mxu0 }
 0x1b0   :  { %v2864_v44 = vpop.f32.mrf.mxu0 }
 0x1b6   :  { %v4276_v45 = vpop.f32.mrf.mxu1 }
 0x1b8   :  { %v2882_v47 = vpop.f32.mrf.mxu1 }
 0x1be   :  { %v954_v48 = vpop.f32.mrf.mxu0 }
 0x1c0   :  { %v2867_v49 = vpop.f32.mrf.mxu0 }
 0x1c6   :  { %v4278_v50 = vpop.f32.mrf.mxu1 }
 0x1c8   :  { %v2885_v52 = vpop.f32.mrf.mxu1 }
 0x1cf   :  { %v958_v53 = vpop.f32.mrf.mxu0 }
 0x1d1   :  { %v2870_v54 = vpop.f32.mrf.mxu0 }
 0x1d6   :  { %v4280_v55 = vpop.f32.mrf.mxu1 }
 0x1d8   :  { %v2888_v57 = vpop.f32.mrf.mxu1 }
 0x1da   :  { %v963_v59 = vpop.f32.mrf.mxu0 }
 0x1db   :  { %v1061_v60 = vpop.f32.mrf.mxu1 }
 0x1dc   :  { %v2873_v62 = vpop.f32.mrf.mxu0  ;;  %v1062_v1 = vadd.f32 %v1061_v60, %v4109_v31 }
 0x1dd   :  { %v2907_v0 = vpop.f32.mrf.mxu1 }
 0x1de   :  { %v1285_v2 = vpop.f32.mrf.mxu0 }
 0x1df   :  { %v1066_v61 = vpop.f32.mrf.mxu1  ;;  %v4283_v3 = vadd.f32 %v1285_v2, %v1062_v1 }
 0x1e0   :  { %v2974_v6 = vpop.f32.mrf.mxu0  ;;  %v1067_v8 = vadd.f32 %v1066_v61, %v4129_v34 }
 0x1e1   :  { %v2910_v4 = vpop.f32.mrf.mxu1 }
 0x1e3   :  { %v1071_v9 = vpop.f32.mrf.mxu1  ;;  %v1290_v10 = vpop.f32.mrf.mxu0 }
 0x1e4   :  { %v4286_v12 = vadd.f32 %v1290_v10, %v1067_v8  ;;  %v1072_v17 = vadd.f32 %v1071_v9, %v4147_v42 }
 0x1e5   :  { %v2913_v14 = vpop.f32.mrf.mxu1  ;;  %v2977_v20 = vpop.f32.mrf.mxu0 }
 0x1e7   :  { %v1076_v13 = vpop.f32.mrf.mxu1  ;;  %v1295_v18 = vpop.f32.mrf.mxu0 }
 0x1e8   :  { %v4289_v19 = vadd.f32 %v1295_v18, %v1072_v17  ;;  %v1077_v23 = vadd.f32 %v1076_v13, %v4161_v5 }
 0x1e9   :  { %v2916_v21 = vpop.f32.mrf.mxu1  ;;  %v2980_v28 = vpop.f32.mrf.mxu0 }
 0x1eb   :  { %v1081_v24 = vpop.f32.mrf.mxu1  ;;  %v1300_v25 = vpop.f32.mrf.mxu0 }
 0x1ec   :  { %v4292_v26 = vadd.f32 %v1300_v25, %v1077_v23  ;;  %v1082_v31 = vadd.f32 %v1081_v24, %v4179_v46 }
 0x1ed   :  { %v2919_v27 = vpop.f32.mrf.mxu1  ;;  %v2983_v29 = vpop.f32.mrf.mxu0 }
 0x1ef   :  { %v1086_v32 = vpop.f32.mrf.mxu1  ;;  %v1305_v33 = vpop.f32.mrf.mxu0 }
 0x1f0   :  { %v4295_v34 = vadd.f32 %v1305_v33, %v1082_v31  ;;  %v1087_v58 = vadd.f32 %v1086_v32, %v4197_v56 }
 0x1f1   :  { %v2922_v36 = vpop.f32.mrf.mxu1  ;;  %v2986_v42 = vpop.f32.mrf.mxu0 }
 0x1f3   :  { %v1091_v16 = vpop.f32.mrf.mxu1  ;;  %v1310_v22 = vpop.f32.mrf.mxu0 }
 0x1f4   :  { %v4298_v30 = vadd.f32 %v1310_v22, %v1087_v58  ;;  %v1092_v11 = vadd.f32 %v1091_v16, %v4231_v15 }
 0x1f5   :  { %v2925_v5 = vpop.f32.mrf.mxu1  ;;  %v2989_v63 = vpop.f32.mrf.mxu0 }
 0x1f7   :  { %v1096_v51 = vpop.f32.mrf.mxu1  ;;  %v1315_v35 = vpop.f32.mrf.mxu0 }
 0x1f8   :  { %v4301_v37 = vadd.f32 %v1315_v35, %v1092_v11 }
 0x1f9   :  { %v2928_v46 = vpop.f32.mrf.mxu1  ;;  %v2992_v38 = vpop.f32.mrf.mxu0 }
 0x1fb   :  { %v1100_v41 = vpop.f32.mrf.mxu1  ;;  %v1320_v43 = vpop.f32.mrf.mxu0 }
 0x1fd   :  { %v2931_v44 = vpop.f32.mrf.mxu1  ;;  %v2995_v47 = vpop.f32.mrf.mxu0 }
 0x1ff   :  { %v1104_v48 = vpop.f32.mrf.mxu1  ;;  %v1324_v56 = vpop.f32.mrf.mxu0 }
 0x201   :  { %v2934_v49 = vpop.f32.mrf.mxu1  ;;  %v2998_v52 = vpop.f32.mrf.mxu0 }
 0x203   :  { %v1108_v54 = vpop.f32.mrf.mxu1  ;;  %v1328_v57 = vpop.f32.mrf.mxu0 }
 0x204   :  { %v1109_v60 = vadd.f32 %v1108_v54, %v958_v53 }
 0x205   :  { %v2937_v62 = vpop.f32.mrf.mxu1  ;;  %v3001_v0 = vpop.f32.mrf.mxu0 }
 0x207   :  { %v1113_v15 = vpop.f32.mrf.mxu1  ;;  %v1332_v1 = vpop.f32.mrf.mxu0 }
 0x208   :  { %v1114_v61 = vadd.f32 %v1113_v15, %v963_v59  ;;  %v4303_v2 = vadd.f32 %v1332_v1, %v1109_v60 }
 0x209   :  { %v2940_v4 = vpop.f32.mrf.mxu1  ;;  %v3004_v6 = vpop.f32.mrf.mxu0 }
 0x20b   :  { %v1118_v8 = vpop.f32.mrf.mxu1  ;;  %v1337_v9 = vpop.f32.mrf.mxu0 }
 0x20c   :  { %v4305_v10 = vadd.f32 %v1337_v9, %v1114_v61  ;;  %v1119_v17 = vadd.f32 %v1118_v8, %v4249_v40 }
 0x20d   :  { %v2943_v14 = vpop.f32.mrf.mxu1  ;;  %v3007_v20 = vpop.f32.mrf.mxu0 }
 0x20f   :  { %v1123_v13 = vpop.f32.mrf.mxu1  ;;  %v1342_v18 = vpop.f32.mrf.mxu0 }
 0x210   :  { %v4308_v53 = vadd.f32 %v1342_v18, %v1119_v17  ;;  %v1124_v59 = vadd.f32 %v1123_v13, %v4274_v39 }
 0x211   :  { %v2946_v21 = vpop.f32.mrf.mxu1  ;;  %v3010_v28 = vpop.f32.mrf.mxu0 }
 0x213   :  { %v1128_v23 = vpop.f32.mrf.mxu1  ;;  %v1347_v24 = vpop.f32.mrf.mxu0 }
 0x214   :  { %v4311_v25 = vadd.f32 %v1347_v24, %v1124_v59  ;;  %v1129_v31 = vadd.f32 %v1128_v23, %v4276_v45 }
 0x215   :  { %v2949_v27 = vpop.f32.mrf.mxu1  ;;  %v3013_v29 = vpop.f32.mrf.mxu0 }
 0x217   :  { %v1133_v32 = vpop.f32.mrf.mxu1  ;;  %v1352_v33 = vpop.f32.mrf.mxu0 }
 0x218   :  { %v4314_v36 = vadd.f32 %v1352_v33, %v1129_v31  ;;  %v1134_v58 = vadd.f32 %v1133_v32, %v4278_v50 }
 0x219   :  { %v2952_v40 = vpop.f32.mrf.mxu1  ;;  %v3016_v42 = vpop.f32.mrf.mxu0 }
 0x21b   :  { %v1138_v16 = vpop.f32.mrf.mxu1  ;;  %v1357_v22 = vpop.f32.mrf.mxu0 }
 0x21c   :  { %v4317_v5 = vadd.f32 %v1357_v22, %v1134_v58  ;;  %v1139_v11 = vadd.f32 %v1138_v16, %v4280_v55 }
 0x21d   :  { %v2955_v39 = vpop.f32.mrf.mxu1  ;;  %v3019_v63 = vpop.f32.mrf.mxu0 }
 0x21f   :  { %v1362_v51 = vpop.f32.mrf.mxu0  ;;  %v1523_v35 = vpop.f32.mrf.mxu1 }
 0x220   :  { %v4320_v46 = vadd.f32 %v1362_v51, %v1139_v11  ;;  %v1604_v44 = vadd.f32 %v1523_v35, %v4283_v3 }
 0x221   :  { %v3022_v45 = vpop.f32.mrf.mxu0  ;;  %v3041_v38 = vpop.f32.mrf.mxu1 }
 0x223   :  { %v1528_v41 = vpop.f32.mrf.mxu1  ;;  %v1761_v43 = vpop.f32.mrf.mxu0 }
 0x224   :  { %v1605_v48 = vadd.f32 %v1528_v41, %v4286_v12  ;;  %v4324_v56 = vadd.f32 %v1761_v43, %v1604_v44 }
 0x225   :  { %v3044_v47 = vpop.f32.mrf.mxu1  ;;  %v3108_v50 = vpop.f32.mrf.mxu0 }
 0x226   :  { %v1871_v62 = vrot.slane %v4324_v56, 1  ;;  %v2021_v23 = vrot.slane %v4324_v56, 3  ;;  %v2096_v58 = vrot.slane %v4324_v56, 4 }
 0x227   :  { %v1533_v49 = vpop.f32.mrf.mxu1  ;;  %v1766_v52 = vpop.f32.mrf.mxu0 }
 0x228   :  { %v4326_v54 = vadd.f32 %v1766_v52, %v1605_v48  ;;  %v1606_v60 = vadd.f32 %v1533_v49, %v4289_v19  ;;  %v1946_v19 = vrot.slane %v4324_v56, 2 }
 0x229   :  { %v3047_v55 = vpop.f32.mrf.mxu1  ;;  %v3111_v57 = vpop.f32.mrf.mxu0 }
 0x22a   :  { %v1872_v0 = vrot.slane %v4326_v54, 1  ;;  %v1947_v61 = vrot.slane %v4326_v54, 2  ;;  %v2022_v13 = vrot.slane %v4326_v54, 3  ;;  %v2097_v29 = vrot.slane %v4326_v54, 4 }
 0x22b   :  { %v1538_v3 = vpop.f32.mrf.mxu1  ;;  %v1771_v15 = vpop.f32.mrf.mxu0 }
 0x22c   :  { %v4331_v1 = vadd.f32 %v1771_v15, %v1606_v60  ;;  %v1873_v12 = vsel %vm1870_vm2, %v1871_v62, %v1872_v0  ;;  %v1948_v20 = vsel %vm1945_vm3, %v1946_v19, %v1947_v61  ;;  %v1607_v59 = vadd.f32 %v1538_v3, %v4292_v26 }
 0x22d   :  { %v3114_v4 = vpop.f32.mrf.mxu0  ;;  %1897 = vrot.lane.b32.xlu0 %v1873_v12, %s3273_s3  ;;  %v3050_v6 = vpop.f32.mrf.mxu1  ;;  %v2023_v32 = vsel %vm2020_vm4, %v2021_v23, %v2022_v13  ;;  %v2098_v63 = vsel %vm2095_vm5, %v2096_v58, %v2097_v29 }
 0x22e   :  { %v1874_v8 = vrot.slane %v4331_v1, 1  ;;  %v1949_v18 = vrot.slane %v4331_v1, 2  ;;  %v2024_v40 = vrot.slane %v4331_v1, 3  ;;  %v2099_v35 = vrot.slane %v4331_v1, 4 }
 0x22f   :  { %v1543_v9 = vpop.f32.mrf.mxu1  ;;  %v1776_v14 = vpop.f32.mrf.mxu0 }
 0x230   :  { %v1875_v17 = vsel %vm1870_vm2, %v1872_v0, %v1874_v8  ;;  %v4347_v31 = vadd.f32 %v1776_v14, %v1607_v59  ;;  %v1950_v33 = vsel %vm1945_vm3, %v1947_v61, %v1949_v18  ;;  %v1608_v16 = vadd.f32 %v1543_v9, %v4295_v34 }
 0x231   :  { %v3117_v21 = vpop.f32.mrf.mxu0  ;;  %1972 = vrot.lane.b32.xlu0 %v1948_v20, %s3274_s13  ;;  %1899 = vrot.lane.b32.xlu1 %v1875_v17, %s3273_s3  ;;  %v3053_v28 = vpop.f32.mrf.mxu1  ;;  %v2025_v51 = vsel %vm2020_vm4, %v2022_v13, %v2024_v40  ;;  %v2100_v44 = vsel %vm2095_vm5, %v2097_v29, %v2099_v35 }
 0x232   :  { %v1876_v45 = vrot.slane %v4347_v31, 1  ;;  %v1951_v50 = vrot.slane %v4347_v31, 2  ;;  %v2026_v0 = vrot.slane %v4347_v31, 3  ;;  %v2101_v19 = vrot.slane %v4347_v31, 4 }
 0x233   :  { %v1548_v24 = vpop.f32.mrf.mxu1  ;;  %v1781_v27 = vpop.f32.mrf.mxu0 }
 0x234   :  { %v4357_v11 = vadd.f32 %v1781_v27, %v1608_v16  ;;  %v1877_v47 = vsel %vm1870_vm2, %v1874_v8, %v1876_v45  ;;  %v1952_v60 = vsel %vm1945_vm3, %v1949_v18, %v1951_v50  ;;  %v1609_v61 = vadd.f32 %v1548_v24, %v4298_v30 }
 0x235   :  { %v3120_v42 = vpop.f32.mrf.mxu0  ;;  %2047 = vrot.lane.b32.xlu0 %v2023_v32, %s3275_s14  ;;  %1974 = vrot.lane.b32.xlu1 %v1950_v33, %s3274_s13  ;;  %v3056_v26 = vpop.f32.mrf.mxu1  ;;  %v2027_v9 = vsel %vm2020_vm4, %v2024_v40, %v2026_v0  ;;  %v2102_v28 = vsel %vm2095_vm5, %v2099_v35, %v2101_v19 }
 0x236   :  { %v1878_v48 = vrot.slane %v4357_v11, 1  ;;  %v1953_v3 = vrot.slane %v4357_v11, 2  ;;  %v2028_v20 = vrot.slane %v4357_v11, 3  ;;  %v2103_v24 = vrot.slane %v4357_v11, 4 }
 0x237   :  { %v1553_v22 = vpop.f32.mrf.mxu1  ;;  %v1786_v39 = vpop.f32.mrf.mxu0 }
 0x238   :  { %v1879_v62 = vsel %vm1870_vm2, %v1876_v45, %v1878_v48  ;;  %v4378_v8 = vadd.f32 %v1786_v39, %v1609_v61  ;;  %v1954_v14 = vsel %vm1945_vm3, %v1951_v50, %v1953_v3  ;;  %v1610_v30 = vadd.f32 %v1553_v22, %v4301_v37 }
 0x239   :  { %v3123_v38 = vpop.f32.mrf.mxu0  ;;  %2122 = vrot.lane.b32.xlu0 %v2098_v63, %s3276_s0  ;;  %2049 = vrot.lane.b32.xlu1 %v2025_v51, %s3275_s14  ;;  %v3059_v41 = vpop.f32.mrf.mxu1  ;;  %v2029_v23 = vsel %vm2020_vm4, %v2026_v0, %v2028_v20  ;;  %v2104_v37 = vsel %vm2095_vm5, %v2101_v19, %v2103_v24 }
 0x23a   :  { %v1880_v27 = vrot.slane %v4378_v8, 1  ;;  %v1955_v26 = vrot.slane %v4378_v8, 2  ;;  %v2030_v51 = vrot.slane %v4378_v8, 3 }
 0x23b   :  { %v1558_v34 = vpop.f32.mrf.mxu1  ;;  %v1791_v43 = vpop.f32.mrf.mxu0 }
 0x23c   :  { %v1848_v59 = vadd.f32 %v1791_v43, %v1610_v30  ;;  %v1881_v42 = vsel %vm1870_vm2, %v1878_v48, %v1880_v27  ;;  %v1956_v35 = vsel %vm1945_vm3, %v1953_v3, %v1955_v26  ;;  %v2031_v50 = vsel %vm2020_vm4, %v2028_v20, %v2030_v51 }
 0x23d   :  { %v3126_v49 = vpop.f32.mrf.mxu0  ;;  %2124 = vrot.lane.b32.xlu1 %v2100_v44, %s3276_s0  ;;  %1901 = vrot.lane.b32.xlu0 %v1877_v47, %s3273_s3  ;;  %v3062_v52 = vpop.f32.mrf.mxu1  ;;  %v2105_v48 = vrot.slane %v4378_v8, 4 }
 0x23e   :  { %v1882_v58 = vrot.slane %v1848_v59, 1  ;;  %v1957_v38 = vrot.slane %v1848_v59, 2 }
 0x23f   :  { %v1562_v55 = vpop.f32.mrf.mxu1  ;;  %v1796_v57 = vpop.f32.mrf.mxu0 }
 0x240   :  { %v1883_v45 = vsel %vm1870_vm2, %v1880_v27, %v1882_v58  ;;  %v1958_v55 = vsel %vm1945_vm3, %v1955_v26, %v1957_v38  ;;  %v2032_v57 = vrot.slane %v1848_v59, 3 }
 0x241   :  { %v3129_v15 = vpop.f32.mrf.mxu0  ;;  %1976 = vrot.lane.b32.xlu0 %v1952_v60, %s3274_s13  ;;  %1903 = vrot.lane.b32.xlu1 %v1879_v62, %s3273_s3  ;;  %v3065_v12 = vpop.f32.mrf.mxu1 }
 0x242   :  { %v2106_v12 = vsel %vm2095_vm5, %v2103_v24, %v2105_v48  ;;  %v2033_v61 = vsel %vm2020_vm4, %v2030_v51, %v2032_v57 }
 0x243   :  { %v1566_v4 = vpop.f32.mrf.mxu1  ;;  %v1800_v6 = vpop.f32.mrf.mxu0 }
 0x244   :  { %v2107_v4 = vrot.slane %v1848_v59, 4 }
 0x245   :  { %v3132_v17 = vpop.f32.mrf.mxu0  ;;  %2051 = vrot.lane.b32.xlu0 %v2027_v9, %s3275_s14  ;;  %1978 = vrot.lane.b32.xlu1 %v1954_v14, %s3274_s13  ;;  %v3068_v13 = vpop.f32.mrf.mxu1 }
 0x246   :  { %v2108_v17 = vsel %vm2095_vm5, %v2105_v48, %v2107_v4 }
 0x247   :  { %v1570_v18 = vpop.f32.mrf.mxu1  ;;  %v1804_v21 = vpop.f32.mrf.mxu0 }
 0x248   :  { %v1611_v49 = vadd.f32 %v1570_v18, %v4303_v2 }
 0x249   :  { %v3135_v29 = vpop.f32.mrf.mxu0  ;;  %2126 = vrot.lane.b32.xlu0 %v2102_v28, %s3276_s0  ;;  %2053 = vrot.lane.b32.xlu1 %v2029_v23, %s3275_s14  ;;  %v3071_v32 = vpop.f32.mrf.mxu1 }
 0x24b   :  { %v1575_v33 = vpop.f32.mrf.mxu1  ;;  %v1808_v40 = vpop.f32.mrf.mxu0 }
 0x24c   :  { %v1612_v43 = vadd.f32 %v1575_v33, %v4305_v10  ;;  %v4411_v10 = vadd.f32 %v1808_v40, %v1611_v49 }
 0x24d   :  { %v3138_v16 = vpop.f32.mrf.mxu0  ;;  %2128 = vrot.lane.b32.xlu1 %v2104_v37, %s3276_s0  ;;  %1905 = vrot.lane.b32.xlu0 %v1881_v42, %s3273_s3  ;;  %v3074_v22 = vpop.f32.mrf.mxu1 }
 0x24e   :  { %v1884_v14 = vrot.slane %v4411_v10, 1  ;;  %v1959_v59 = vrot.slane %v4411_v10, 2  ;;  %v2034_v16 = vrot.slane %v4411_v10, 3 }
 0x24f   :  { %v1580_v39 = vpop.f32.mrf.mxu1  ;;  %v1813_v63 = vpop.f32.mrf.mxu0 }
 0x250   :  { %v4406_v52 = vadd.f32 %v1813_v63, %v1612_v43  ;;  %v1613_v0 = vadd.f32 %v1580_v39, %v4308_v53  ;;  %v2109_v39 = vrot.slane %v4411_v10, 4 }
 0x251   :  { %v3141_v41 = vpop.f32.mrf.mxu0  ;;  %1980 = vrot.lane.b32.xlu0 %v1956_v35, %s3274_s13  ;;  %1907 = vrot.lane.b32.xlu1 %v1883_v45, %s3273_s3  ;;  %v3077_v34 = vpop.f32.mrf.mxu1 }
 0x252   :  { %v1885_v6 = vrot.slane %v4406_v52, 1  ;;  %v1960_v30 = vrot.slane %v4406_v52, 2  ;;  %v2035_v29 = vrot.slane %v4406_v52, 3  ;;  %v2110_v37 = vrot.slane %v4406_v52, 4 }
 0x253   :  { %v1585_v44 = vpop.f32.mrf.mxu1  ;;  %v1818_v47 = vpop.f32.mrf.mxu0 }
 0x254   :  { %v4415_v2 = vadd.f32 %v1818_v47, %v1613_v0  ;;  %v1886_v13 = vsel %vm1870_vm2, %v1884_v14, %v1885_v6  ;;  %v1961_v32 = vsel %vm1945_vm3, %v1959_v59, %v1960_v30  ;;  %v1614_v42 = vadd.f32 %v1585_v44, %v4311_v25 }
 0x255   :  { %v3144_v60 = vpop.f32.mrf.mxu0  ;;  %2055 = vrot.lane.b32.xlu0 %v2031_v50, %s3275_s14  ;;  %1982 = vrot.lane.b32.xlu1 %v1958_v55, %s3274_s13  ;;  %v3080_v62 = vpop.f32.mrf.mxu1  ;;  %v2036_v35 = vsel %vm2020_vm4, %v2034_v16, %v2035_v29  ;;  %v2111_v34 = vsel %vm2095_vm5, %v2109_v39, %v2110_v37 }
 0x256   :  { %v1887_v18 = vrot.slane %v4415_v2, 1  ;;  %v1962_v40 = vrot.slane %v4415_v2, 2  ;;  %v2037_v25 = vrot.slane %v4415_v2, 3  ;;  %v2112_v62 = vrot.slane %v4415_v2, 4 }
 0x257   :  { %v1590_v3 = vpop.f32.mrf.mxu1  ;;  %v1823_v15 = vpop.f32.mrf.mxu0 }
 0x258   :  { %v1888_v33 = vsel %vm1870_vm2, %v1885_v6, %v1887_v18  ;;  %v4443_v63 = vadd.f32 %v1823_v15, %v1614_v42  ;;  %v1615_v45 = vadd.f32 %v1590_v3, %v4314_v36  ;;  %v1963_v41 = vsel %vm1945_vm3, %v1960_v30, %v1962_v40 }
 0x259   :  { %v3147_v19 = vpop.f32.mrf.mxu0  ;;  %2130 = vrot.lane.b32.xlu0 %v2106_v12, %s3276_s0  ;;  %2057 = vrot.lane.b32.xlu1 %v2033_v61, %s3275_s14  ;;  %v3083_v9 = vpop.f32.mrf.mxu1  ;;  %v2038_v60 = vsel %vm2020_vm4, %v2035_v29, %v2037_v25  ;;  %v2113_v4 = vsel %vm2095_vm5, %v2110_v37, %v2112_v62  ;;  %v4512_v37 = vld [vmem:[%s4689_s5 + $0x50] sm:$0xff] }
 0x25a   :  { %v1889_v0 = vrot.slane %v4443_v63, 1  ;;  %v1964_v19 = vrot.slane %v4443_v63, 2 }
 0x25b   :  { %v1595_v53 = vpop.f32.mrf.mxu1  ;;  %v1828_v20 = vpop.f32.mrf.mxu0 }
 0x25c   :  { %v1616_v23 = vadd.f32 %v1595_v53, %v4317_v5  ;;  %v4456_v57 = vadd.f32 %v1828_v20, %v1615_v45  ;;  %v1890_v6 = vsel %vm1870_vm2, %v1887_v18, %v1889_v0  ;;  %v1965_v14 = vsel %vm1945_vm3, %v1962_v40, %v1964_v19  ;;  %v4507_v40 = vld [vmem:[%s4689_s5 + $0x58] sm:$0xff] }
 0x25d   :  { %v3150_v21 = vpop.f32.mrf.mxu0  ;;  %2132 = vrot.lane.b32.xlu1 %v2108_v17, %s3276_s0  ;;  %1909 = vrot.lane.b32.xlu0 %v1886_v13, %s3273_s3  ;;  %v3086_v28 = vpop.f32.mrf.mxu1  ;;  %v2039_v20 = vrot.slane %v4443_v63, 3  ;;  %v2114_v18 = vrot.slane %v4443_v63, 4 }
 0x25e   :  { %v1891_v9 = vrot.slane %v4456_v57, 1  ;;  %v1966_v17 = vrot.slane %v4456_v57, 2  ;;  %v2041_v21 = vrot.slane %v4456_v57, 3  ;;  %3158 = vmatpush3.msra.mxu1 %v4507_v40 }
 0x25f   :  { %v1600_v24 = vpop.f32.mrf.mxu1  ;;  %v1833_v27 = vpop.f32.mrf.mxu0  ;;  %v2040_v13 = vsel %vm2020_vm4, %v2037_v25, %v2039_v20  ;;  %v2115_v28 = vsel %vm2095_vm5, %v2112_v62, %v2114_v18  ;;  %3159 = vmatprep.subr.mxu1 %v3271_v7 }
 0x260   :  { %v4436_v26 = vadd.f32 %v1833_v27, %v1616_v23  ;;  %v1617_v22 = vadd.f32 %v1600_v24, %v4320_v46  ;;  %v1892_v53 = vsel %vm1870_vm2, %v1889_v0, %v1891_v9  ;;  %v1967_v30 = vsel %vm1945_vm3, %v1964_v19, %v1966_v17  ;;  %3160 = vmatpush3.msra.mxu1 %v4512_v37 }
 0x261   :  { %v3153_v58 = vpop.f32.mrf.mxu0  ;;  %1984 = vrot.lane.b32.xlu0 %v1961_v32, %s3274_s13  ;;  %1911 = vrot.lane.b32.xlu1 %v1888_v33, %s3273_s3  ;;  %v3089_v5 = vpop.f32.mrf.mxu1  ;;  %v2042_v59 = vsel %vm2020_vm4, %v2039_v20, %v2041_v21  ;;  %v2116_v23 = vrot.slane %v4456_v57, 4 }
 0x262   :  { %v1893_v46 = vrot.slane %v4436_v26, 1  ;;  %v1968_v44 = vrot.slane %v4436_v26, 2  ;;  %v2043_v47 = vrot.slane %v4436_v26, 3  ;;  %v2118_v50 = vrot.slane %v4436_v26, 4  ;;  %3161 = vmatprep.subr.mxu1 %v3271_v7 }
 0x263   :  { %v1838_v51 = vpop.f32.mrf.mxu0  ;;  %v2117_v24 = vsel %vm2095_vm5, %v2114_v18, %v2116_v23 }
 0x264   :  { %v1855_v38 = vadd.f32 %v1838_v51, %v1617_v22  ;;  %v1894_v27 = vsel %vm1870_vm2, %v1891_v9, %v1893_v46  ;;  %v1969_v29 = vsel %vm1945_vm3, %v1966_v17, %v1968_v44  ;;  %v2044_v32 = vsel %vm2020_vm4, %v2041_v21, %v2043_v47 }
 0x265   :  { %v3156_v43 = vpop.f32.mrf.mxu0  ;;  %2059 = vrot.lane.b32.xlu0 %v2036_v35, %s3275_s14  ;;  %1986 = vrot.lane.b32.xlu1 %v1963_v41, %s3274_s13  ;;  %v2119_v33 = vsel %vm2095_vm5, %v2116_v23, %v2118_v50  ;;  %v4563_v23 = vld [vmem:[%s4689_s5 + $0x28] sm:$0xff] }
 0x266   :  { %v1895_v48 = vrot.slane %v1855_v38, 1  ;;  %v1970_v36 = vrot.slane %v1855_v38, 2  ;;  %v2045_v49 = vrot.slane %v1855_v38, 3  ;;  %v2120_v55 = vrot.slane %v1855_v38, 4  ;;  %v4523_v43 = vld [vmem:[%s4688_s4] ss:$0 sm:$0xff] }
 0x268   :  { %v1896_v3 = vsel %vm1870_vm2, %v1893_v46, %v1895_v48  ;;  %v1971_v15 = vsel %vm1945_vm3, %v1968_v44, %v1970_v36  ;;  %v2046_v12 = vsel %vm2020_vm4, %v2043_v47, %v2045_v49  ;;  %v2121_v61 = vsel %vm2095_vm5, %v2118_v50, %v2120_v55  ;;  %v4534_v48 = vld [vmem:[%s4689_s5 + $0x40] sm:$0xff] }
 0x269   :  { %2134 = vrot.lane.b32.xlu0 %v2111_v34, %s3276_s0  ;;  %2061 = vrot.lane.b32.xlu1 %v2038_v60, %s3275_s14  ;;  %v4542_v60 = vld [vmem:[%s4689_s5 + $0x38] sm:$0xff] }
 0x26d   :  { %2136 = vrot.lane.b32.xlu1 %v2113_v4, %s3276_s0  ;;  %1913 = vrot.lane.b32.xlu0 %v1890_v6, %s3273_s3 }
 0x271   :  { %1988 = vrot.lane.b32.xlu0 %v1965_v14, %s3274_s13  ;;  %1915 = vrot.lane.b32.xlu1 %v1892_v53, %s3273_s3 }
 0x275   :  { %2063 = vrot.lane.b32.xlu0 %v2040_v13, %s3275_s14  ;;  %1990 = vrot.lane.b32.xlu1 %v1967_v30, %s3274_s13 }
 0x279   :  { %2138 = vrot.lane.b32.xlu0 %v2115_v28, %s3276_s0  ;;  %2065 = vrot.lane.b32.xlu1 %v2042_v59, %s3275_s14 }
 0x27d   :  { %2140 = vrot.lane.b32.xlu1 %v2117_v24, %s3276_s0  ;;  %1917 = vrot.lane.b32.xlu0 %v1894_v27, %s3273_s3 }
 0x281   :  { %1992 = vrot.lane.b32.xlu0 %v1969_v29, %s3274_s13  ;;  %1919 = vrot.lane.b32.xlu1 %v1896_v3, %s3273_s3  ;;  %s3279_s3 = smov 48  }
 0x285   :  { %2067 = vrot.lane.b32.xlu0 %v2044_v32, %s3275_s14  ;;  %1994 = vrot.lane.b32.xlu1 %v1971_v15, %s3274_s13  ;;  %v4571_v32 = vld [vmem:[%s4689_s5 + $0x20] sm:$0xff] }
 0x289   :  { %2142 = vrot.lane.b32.xlu0 %v2119_v33, %s3276_s0  ;;  %2069 = vrot.lane.b32.xlu1 %v2046_v12, %s3275_s14 }
 0x28d   :  { %2144 = vrot.lane.b32.xlu1 %v2121_v61, %s3276_s0 }
 0x29f   :  { %v1898_v42 = vpop.permute.xlu0 %1897 }
 0x2a0   :  { %v1933_v16 = vadd.f32 %v1898_v42, %v4324_v56 }
 0x2a3   :  { %v1973_v58 = vpop.permute.xlu0 %1972  ;;  %v1900_v5 = vpop.permute.xlu1 %1899 }
 0x2a4   :  { %v2008_v51 = vadd.f32 %v1973_v58, %v1933_v16  ;;  %v1934_v35 = vadd.f32 %v1900_v5, %v4326_v54  ;;  %v4529_v54 = vld [vmem:[%s4689_s5 + $0x48] sm:$0xff]  ;;  %v4578_v58 = vld [vmem:[%s4689_s5 + $0x18] sm:$0xff] }
 0x2a5   :  { %3162 = vmatpush3.msra.mxu1 %v4529_v54 }
 0x2a6   :  { %3163 = vmatprep.subr.mxu1 %v3271_v7 }
 0x2a7   :  { %v2048_v22 = vpop.permute.xlu0 %2047  ;;  %v1975_v39 = vpop.permute.xlu1 %1974  ;;  %3164 = vmatpush3.msra.mxu1 %v4534_v48 }
 0x2a8   :  { %v2083_v25 = vadd.f32 %v2048_v22, %v2008_v51  ;;  %v2009_v41 = vadd.f32 %v1975_v39, %v1934_v35  ;;  %3165 = vmatprep.subr.mxu1 %v3271_v7  ;;  %v4586_v51 = vld [vmem:[%s4689_s5 + $0x10] sm:$0xff] }
 0x2a9   :  { %3166 = vmatpush3.msra.mxu1 %v4542_v60 }
 0x2aa   :  { %3167 = vmatprep.subr.mxu1 %v3271_v7 }
 0x2ab   :  { %v2123_v45 = vpop.permute.xlu0 %2122  ;;  %v2050_v38 = vpop.permute.xlu1 %2049 }
 0x2ac   :  { %v2158_v34 = vadd.f32 %v2123_v45, %v2083_v25  ;;  %v2084_v46 = vadd.f32 %v2050_v38, %v2009_v41 }
 0x2ae   :  { %v2177_v56 = vadd.f32 %v4523_v43, %v2158_v34 }
 0x2af   :  { %v2125_v44 = vpop.permute.xlu1 %2124  ;;  %v1902_v47 = vpop.permute.xlu0 %1901 }
 0x2b0   :  { %v2159_v50 = vadd.f32 %v2125_v44, %v2084_v46  ;;  %v2189_v62 = vmax.f32 %v2177_v56, 0.0  ;;  %v1935_v15 = vadd.f32 %v1902_v47, %v4331_v1 }
 0x2b2   :  { %v2178_v36 = vadd.f32 %v4523_v43, %v2159_v50 }
 0x2b3   :  { %v1977_v49 = vpop.permute.xlu0 %1976  ;;  %v1904_v55 = vpop.permute.xlu1 %1903 }
 0x2b4   :  { %v2190_v0 = vmax.f32 %v2178_v36, 0.0  ;;  %v2010_v6 = vadd.f32 %v1977_v49, %v1935_v15  ;;  %v1936_v9 = vadd.f32 %v1904_v55, %v4347_v31  ;;  %v4558_v31 = vld [vmem:[%s4689_s5 + $0x30] sm:$0xff] }
 0x2b5   :  { %3168 = vmatpush3.msra.mxu1 %v4558_v31 }
 0x2b6   :  { %v2214_v3 = vmax.f32 %v2189_v62, %v2190_v0  ;;  %3169 = vmatprep.subr.mxu1 %v3271_v7  ;;  %v4606_v62 = vld [vmem:[%s4689_s5] sm:$0xff] }
 0x2b7   :  { %v2052_v12 = vpop.permute.xlu0 %2051  ;;  %v1979_v61 = vpop.permute.xlu1 %1978  ;;  %3170 = vmatpush3.msra.mxu1 %v4563_v23 }
 0x2b8   :  { %v2216_v4 = vrot.slane %v2214_v3, 1  ;;  %v2085_v14 = vadd.f32 %v2052_v12, %v2010_v6  ;;  %v2011_v17 = vadd.f32 %v1979_v61, %v1936_v9  ;;  %3171 = vmatprep.subr.mxu1 %v3271_v7 }
 0x2b9   :  { %3172 = vmatpush3.msra.mxu1 %v4571_v32 }
 0x2ba   :  { %v4549_v19 = vmax.f32 %v2214_v3, %v2216_v4  ;;  %3173 = vmatprep.subr.mxu1 %v3271_v7 }
 0x2bb   :  { %v2127_v53 = vpop.permute.xlu0 %2126  ;;  %v2054_v20 = vpop.permute.xlu1 %2053  ;;  %3174 = vmatpush3.msra.mxu1 %v4578_v58 }
 0x2bc   :  { %v2160_v13 = vadd.f32 %v2127_v53, %v2085_v14  ;;  %v2230_v30 = vrot.slane %v4549_v19, 2  ;;  %v2086_v1 = vadd.f32 %v2054_v20, %v2011_v17  ;;  %3175 = vmatprep.subr.mxu1 %v3271_v7 }
 0x2bd   :  { %3176 = vmatpush3.msra.mxu1 %v4586_v51 }
 0x2be   :  { %2231 = vrot.lane.b32.xlu0 %v2230_v30, %s3277_s24  ;;  %v2179_v28 = vadd.f32 %v4523_v43, %v2160_v13  ;;  %3177 = vmatprep.subr.mxu1 %v3271_v7 }
 0x2bf   :  { %v2129_v18 = vpop.permute.xlu1 %2128  ;;  %v1906_v21 = vpop.permute.xlu0 %1905 }
 0x2c0   :  { %v2161_v59 = vadd.f32 %v2129_v18, %v2086_v1  ;;  %v2191_v33 = vmax.f32 %v2179_v28, 0.0  ;;  %v1937_v16 = vadd.f32 %v1906_v21, %v4357_v11 }
 0x2c2   :  { %v2180_v24 = vadd.f32 %v4523_v43, %v2161_v59 }
 0x2c3   :  { %v1981_v27 = vpop.permute.xlu0 %1980  ;;  %v1908_v29 = vpop.permute.xlu1 %1907 }
 0x2c4   :  { %v2192_v42 = vmax.f32 %v2180_v24, 0.0  ;;  %v2012_v25 = vadd.f32 %v1981_v27, %v1937_v16  ;;  %v1938_v11 = vadd.f32 %v1908_v29, %v4378_v8  ;;  %v4598_v8 = vld [vmem:[%s4689_s5 + $0x8] sm:$0xff] }
 0x2c5   :  { %3178 = vmatpush3.msra.mxu1 %v4598_v8 }
 0x2c6   :  { %v2219_v5 = vmax.f32 %v2191_v33, %v2192_v42  ;;  %3179 = vmatprep.subr.mxu1 %v3271_v7 }
 0x2c7   :  { %v2056_v22 = vpop.permute.xlu0 %2055  ;;  %v1983_v39 = vpop.permute.xlu1 %1982  ;;  %3180 = vmatpush3.msra.mxu1 %v4606_v62 }
 0x2c8   :  { %v2221_v35 = vrot.slane %v2219_v5, 1  ;;  %v2087_v38 = vadd.f32 %v2056_v22, %v2012_v25  ;;  %v2013_v46 = vadd.f32 %v1983_v39, %v1938_v11  ;;  %3184 = vmatprep.subr.mxu1 %v3271_v7 }
 0x2ca   :  { %v2223_v45 = vmax.f32 %v2219_v5, %v2221_v35 }
 0x2cb   :  { %v2131_v41 = vpop.permute.xlu0 %2130  ;;  %v2058_v34 = vpop.permute.xlu1 %2057 }
 0x2cc   :  { %v2162_v44 = vadd.f32 %v2131_v41, %v2087_v38  ;;  %2235 = vrot.lane.b32.xlu1 %v2223_v45, %s3278_s12  ;;  %v2238_v47 = vrot.slane %v2223_v45, 2  ;;  %v2088_v56 = vadd.f32 %v2058_v34, %v2013_v46 }
 0x2ce   :  { %2239 = vrot.lane.b32.xlu0 %v2238_v47, %s3279_s3  ;;  %v2181_v49 = vadd.f32 %v4523_v43, %v2162_v44 }
 0x2cf   :  { %v2133_v50 = vpop.permute.xlu1 %2132  ;;  %v1910_v36 = vpop.permute.xlu0 %1909 }
 0x2d0   :  { %v2163_v55 = vadd.f32 %v2133_v50, %v2088_v56  ;;  %v2193_v12 = vmax.f32 %v2181_v49, 0.0  ;;  %v1939_v6 = vadd.f32 %v1910_v36, %v4411_v10 }
 0x2d2   :  { %v2182_v0 = vadd.f32 %v4523_v43, %v2163_v55 }
 0x2d3   :  { %v1985_v3 = vpop.permute.xlu0 %1984  ;;  %v1912_v15 = vpop.permute.xlu1 %1911 }
 0x2d4   :  { %v2194_v61 = vmax.f32 %v2182_v0, 0.0  ;;  %v2014_v20 = vadd.f32 %v1985_v3, %v1939_v6  ;;  %v1940_v13 = vadd.f32 %v1912_v15, %v4406_v52 }
 0x2d6   :  { %v2224_v4 = vmax.f32 %v2193_v12, %v2194_v61 }
 0x2d7   :  { %v2060_v9 = vpop.permute.xlu0 %2059  ;;  %v1987_v14 = vpop.permute.xlu1 %1986 }
 0x2d8   :  { %v2226_v53 = vrot.slane %v2224_v4, 1  ;;  %v2089_v30 = vadd.f32 %v2060_v9, %v2014_v20  ;;  %v2015_v21 = vadd.f32 %v1987_v14, %v1940_v13 }
 0x2da   :  { %v2228_v17 = vmax.f32 %v2224_v4, %v2226_v53 }
 0x2db   :  { %v2135_v1 = vpop.permute.xlu0 %2134  ;;  %v2062_v18 = vpop.permute.xlu1 %2061 }
 0x2dc   :  { %v2164_v28 = vadd.f32 %v2135_v1, %v2089_v30  ;;  %2243 = vrot.lane.b32.xlu1 %v2228_v17, %s3276_s0  ;;  %v2246_v59 = vrot.slane %v2228_v17, 2  ;;  %v2090_v24 = vadd.f32 %v2062_v18, %v2015_v21 }
 0x2de   :  { %2247 = vrot.lane.b32.xlu0 %v2246_v59, %s3275_s14  ;;  %v2183_v29 = vadd.f32 %v4523_v43, %v2164_v28 }
 0x2df   :  { %v2137_v27 = vpop.permute.xlu1 %2136  ;;  %v1914_v10 = vpop.permute.xlu0 %1913 }
 0x2e0   :  { %v2165_v33 = vadd.f32 %v2137_v27, %v2090_v24  ;;  %v2195_v16 = vmax.f32 %v2183_v29, 0.0  ;;  %v1941_v35 = vadd.f32 %v1914_v10, %v4415_v2 }
 0x2e2   :  { %v2184_v42 = vadd.f32 %v4523_v43, %v2165_v33 }
 0x2e3   :  { %v1989_v5 = vpop.permute.xlu0 %1988  ;;  %v1916_v52 = vpop.permute.xlu1 %1915 }
 0x2e4   :  { %v2196_v22 = vmax.f32 %v2184_v42, 0.0  ;;  %v2016_v38 = vadd.f32 %v1989_v5, %v1941_v35  ;;  %v1942_v34 = vadd.f32 %v1916_v52, %v4443_v63 }
 0x2e6   :  { %v2346_v39 = vmax.f32 %v2195_v16, %v2196_v22 }
 0x2e7   :  { %v2064_v25 = vpop.permute.xlu0 %2063  ;;  %v1991_v45 = vpop.permute.xlu1 %1990 }
 0x2e8   :  { %v2348_v11 = vrot.slane %v2346_v39, 1  ;;  %v2091_v46 = vadd.f32 %v2064_v25, %v2016_v38  ;;  %v2017_v56 = vadd.f32 %v1991_v45, %v1942_v34 }
 0x2ea   :  { %v4618_v41 = vmax.f32 %v2346_v39, %v2348_v11 }
 0x2eb   :  { %v2139_v44 = vpop.permute.xlu0 %2138  ;;  %v2066_v47 = vpop.permute.xlu1 %2065 }
 0x2ec   :  { %v2166_v50 = vadd.f32 %v2139_v44, %v2091_v46  ;;  %v2362_v36 = vrot.slane %v4618_v41, 2  ;;  %v2092_v49 = vadd.f32 %v2066_v47, %v2017_v56 }
 0x2ee   :  { %2363 = vrot.lane.b32.xlu1 %v2362_v36, %s3277_s24  ;;  %v2185_v0 = vadd.f32 %v4523_v43, %v2166_v50 }
 0x2ef   :  { %v2141_v55 = vpop.permute.xlu1 %2140  ;;  %v1918_v2 = vpop.permute.xlu0 %1917 }
 0x2f0   :  { %v2167_v3 = vadd.f32 %v2141_v55, %v2092_v49  ;;  %v2197_v63 = vmax.f32 %v2185_v0, 0.0  ;;  %v1943_v9 = vadd.f32 %v1918_v2, %v4456_v57 }
 0x2f2   :  { %v2186_v15 = vadd.f32 %v4523_v43, %v2167_v3 }
 0x2f3   :  { %v1993_v12 = vpop.permute.xlu0 %1992  ;;  %v1920_v61 = vpop.permute.xlu1 %1919 }
 0x2f4   :  { %v2198_v4 = vmax.f32 %v2186_v15, 0.0  ;;  %v2018_v17 = vadd.f32 %v1993_v12, %v1943_v9  ;;  %v1944_v30 = vadd.f32 %v1920_v61, %v4436_v26 }
 0x2f6   :  { %v2351_v6 = vmax.f32 %v2197_v63, %v2198_v4 }
 0x2f7   :  { %v2068_v14 = vpop.permute.xlu0 %2067  ;;  %v1995_v53 = vpop.permute.xlu1 %1994 }
 0x2f8   :  { %v2353_v20 = vrot.slane %v2351_v6, 1  ;;  %v2093_v1 = vadd.f32 %v2068_v14, %v2018_v17  ;;  %v2019_v28 = vadd.f32 %v1995_v53, %v1944_v30 }
 0x2fa   :  { %v2355_v13 = vmax.f32 %v2351_v6, %v2353_v20 }
 0x2fb   :  { %v2143_v18 = vpop.permute.xlu0 %2142  ;;  %v2070_v21 = vpop.permute.xlu1 %2069 }
 0x2fc   :  { %v2168_v59 = vadd.f32 %v2143_v18, %v2093_v1  ;;  %2367 = vrot.lane.b32.xlu0 %v2355_v13, %s3278_s12  ;;  %v2370_v24 = vrot.slane %v2355_v13, 2  ;;  %v2094_v27 = vadd.f32 %v2070_v21, %v2019_v28 }
 0x2fe   :  { %2371 = vrot.lane.b32.xlu1 %v2370_v24, %s3279_s3  ;;  %v2187_v57 = vadd.f32 %v4523_v43, %v2168_v59 }
 0x2ff   :  { %v2145_v10 = vpop.permute.xlu1 %2144 }
 0x300   :  { %v2169_v29 = vadd.f32 %v2145_v10, %v2094_v27  ;;  %v2199_v42 = vmax.f32 %v2187_v57, 0.0 }
 0x302   :  { %v2188_v33 = vadd.f32 %v4523_v43, %v2169_v29 }
 0x304   :  { %v2200_v5 = vmax.f32 %v2188_v33, 0.0 }
 0x306   :  { %v2356_v26 = vmax.f32 %v2199_v42, %v2200_v5 }
 0x308   :  { %v2358_v52 = vrot.slane %v2356_v26, 1 }
 0x30a   :  { %v2360_v16 = vmax.f32 %v2356_v26, %v2358_v52 }
 0x30c   :  { %2375 = vrot.lane.b32.xlu0 %v2360_v16, %s3276_s0  ;;  %v2378_v22 = vrot.slane %v2360_v16, 2 }
 0x30e   :  { %2379 = vrot.lane.b32.xlu1 %v2378_v22, %s3275_s14 }
 0x330   :  { %v2232_v39 = vpop.permute.xlu0 %2231 }
 0x331   :  { %v2251_v25 = vsel %vm2250_vm6, %v4549_v19, %v2232_v39 }
 0x33e   :  { %v2236_v35 = vpop.permute.xlu1 %2235 }
 0x33f   :  { %v2253_v45 = vsel %vm2252_vm7, %v2251_v25, %v2236_v35 }
 0x340   :  { %v2240_v43 = vpop.permute.xlu0 %2239 }
 0x341   :  { %v2255_v11 = vsel %vm2254_vm8, %v2253_v45, %v2240_v43 }
 0x34e   :  { %v2244_v38 = vpop.permute.xlu1 %2243 }
 0x34f   :  { %v2256_v34 = vsel %vm737_vm1, %v2255_v11, %v2244_v38 }
 0x350   :  { %v2248_v46 = vpop.permute.xlu0 %2247 }
 0x351   :  { %v2258_v44 = vsel %vm2257_vm9, %v2256_v34, %v2248_v46 }
 0x352   :  { %3182 = vmatmul.mubr.msk.f32.vlgmr.msra.gmra.mxu1 %vm2259_vm10, %v2258_v44 }
 0x353   :  { %3185 = vmatpush3.msra.mxu1 %v4507_v40  ;;  %3208 = vmatprep.mubr.msk.f32.mxu1 %vm3272_vm0, %v3271_v7 }
 0x354   :  { %3186 = vmatprep.subr.mxu1 %v3271_v7 }
 0x355   :  { %3187 = vmatpush3.msra.mxu1 %v4512_v37 }
 0x356   :  { %3188 = vmatprep.subr.mxu1 %v3271_v7 }
 0x357   :  { %3189 = vmatpush3.msra.mxu1 %v4529_v54 }
 0x358   :  { %3190 = vmatprep.subr.mxu1 %v3271_v7 }
 0x359   :  { %3191 = vmatpush3.msra.mxu1 %v4534_v48 }
 0x35a   :  { %3192 = vmatprep.subr.mxu1 %v3271_v7 }
 0x35b   :  { %3193 = vmatpush3.msra.mxu1 %v4542_v60 }
 0x35c   :  { %3194 = vmatprep.subr.mxu1 %v3271_v7 }
 0x35d   :  { %3195 = vmatpush3.msra.mxu1 %v4558_v31 }
 0x35e   :  { %3196 = vmatprep.subr.mxu1 %v3271_v7 }
 0x35f   :  { %3197 = vmatpush3.msra.mxu1 %v4563_v23 }
 0x360   :  { %3198 = vmatprep.subr.mxu1 %v3271_v7  ;;  %v2364_v40 = vpop.permute.xlu1 %2363 }
 0x361   :  { %3199 = vmatpush3.msra.mxu1 %v4571_v32  ;;  %v2382_v54 = vsel %vm2250_vm6, %v4618_v41, %v2364_v40 }
 0x362   :  { %3200 = vmatprep.subr.mxu1 %v3271_v7 }
 0x363   :  { %3201 = vmatpush3.msra.mxu1 %v4578_v58 }
 0x364   :  { %3202 = vmatprep.subr.mxu1 %v3271_v7 }
 0x365   :  { %3203 = vmatpush3.msra.mxu1 %v4586_v51 }
 0x366   :  { %3204 = vmatprep.subr.mxu1 %v3271_v7 }
 0x367   :  { %3205 = vmatpush3.msra.mxu1 %v4598_v8 }
 0x368   :  { %3206 = vmatprep.subr.mxu1 %v3271_v7  ;;  %v2213_v7 = vld [vmem:[%s4690_s6] sm:$0x1]  ;;  %s3280_s6 = smov [#allocation3]  }
 0x369   :  { %3207 = vmatpush3.msra.mxu1 %v4606_v62  ;;  %s2478_s0 = sshll.u32 %s3280_s6, 4  ;;  %s2479_s0 = int_to_ptr.vmem [resolvable:$true] %s2478_s0 }
 0x36a   :  { %s3248_s17 = scalar_lea.vmem %s2479_s0, 32  ;;  %p3253_p1 = scmp.lt.s32.totalorder %s2479_s0, %s2479_s0 }
 0x36b   :  { %p3249_p0 = scmp.ne.s32.totalorder %s2479_s0, %s3248_s17  ;;  %p3254_p2 = scmp.lt.s32.totalorder %s3248_s17, %s3248_s17 }
 0x36d   :  { %p3255_p3 = por %p3254_p2, %p3253_p1 }
 0x36e   :  { %v2368_v37 = vpop.permute.xlu0 %2367 }
 0x36f   :  { %v2383_v48 = vsel %vm2252_vm7, %v2382_v54, %v2368_v37  ;;  %p3256_p4 = pnand %p3255_p3, %p3249_p0 }
 0x370   :  { %v2372_v60 = vpop.permute.xlu1 %2371 }
 0x371   :  { %v2384_v19 = vsel %vm2254_vm8, %v2383_v48, %v2372_v60 }
 0x37e   :  { %v2376_v31 = vpop.permute.xlu0 %2375 }
 0x37f   :  { %v2385_v23 = vsel %vm737_vm1, %v2384_v19, %v2376_v31 }
 0x380   :  { %v2380_v32 = vpop.permute.xlu1 %2379 }
 0x381   :  { %v2386_v58 = vsel %vm2257_vm9, %v2385_v23, %v2380_v32 }
 0x382   :  { %3209 = vmatmul.mubr.msk.f32.vlgmr.msra.gmra.mxu1 %vm2259_vm10, %v2386_v58 }
 0x412   :  { %v2329_v51 = vpop.f32.mrf.mxu1 }
 0x413   :  { %v2330_v8 = vadd.f32 %v2329_v51, %v2213_v7 }
 0x414   :  { %v3183_v62 = vpop.f32.mrf.mxu1 }
 0x415   :  { %v2334_v41 = vsel %vm2333_vm11, %v2330_v8, -inf }
 0x416   :  { %2335 = vmax.xlane.f32.xlu0 %v2334_v41 }
 0x442   :  { %v2456_v47 = vpop.f32.mrf.mxu1 }
 0x443   :  { %v2457_v56 = vadd.f32 %v2456_v47, %v2213_v7 }
 0x444   :  { %v3210_v50 = vpop.f32.mrf.mxu1 }
 0x445   :  { %v2460_v36 = vsel %vm2333_vm11, %v2457_v56, -inf }
 0x446   :  { %2461 = vmax.xlane.f32.xlu1 %v2460_v36 }
 0x49f   :  { %v2336_v49 = vpop.xlane.xlu0 %2335 }
 0x4a0   :  { %v2337_v55 = vsub.f32 %v2330_v8, %v2336_v49 }
 0x4a2   :  { %v2338_v2 = vmul.f32 1.442695, %v2337_v55 }
 0x4a4   :  { %3240 = vpow2.f32 %v2338_v2 }
 0x4b1   :  { %v3241_v0 = vpop.eup %3240 }
 0x4b2   :  { %v2340_v3 = vsel %vm2333_vm11, %v3241_v0, 0.0 }
 0x4b3   :  { %2341 = vadd.xlane.f32.xlu0 %v2340_v3 }
 0x4cf   :  { %v2462_v15 = vpop.xlane.xlu1 %2461 }
 0x4d0   :  { %v2463_v12 = vsub.f32 %v2457_v56, %v2462_v15 }
 0x4d2   :  { %v2464_v61 = vmul.f32 1.442695, %v2463_v12 }
 0x4d4   :  { %3242 = vpow2.f32 %v2464_v61 }
 0x4e1   :  { %v3243_v63 = vpop.eup %3242 }
 0x4e2   :  { %v2466_v4 = vsel %vm2333_vm11, %v3243_v63, 0.0 }
 0x4e3   :  { %2467 = vadd.xlane.f32.xlu0 %v2466_v4 }
 0x53c   :  { %v2342_v6 = vpop.xlane.xlu0 %2341 }
 0x53d   :  { %3244 = vrcp.f32 %v2342_v6 }
 0x54a   :  { %v3245_v9 = vpop.eup %3244 }
 0x54b   :  { %v2344_v14 = vmul.f32 %v3245_v9, %v3241_v0 }
 0x54d   :  { %2345 = vst.msk [vmem:[#allocation3] sm:$0x1] %vm2333_vm11, %v2344_v14 }
 0x56c   :  { %v2468_v53 = vpop.xlane.xlu0 %2467 }
 0x56d   :  { %3246 = vrcp.f32 %v2468_v53 }
 0x57a   :  { %v3247_v20 = vpop.eup %3246 }
 0x57b   :  { %v2470_v17 = vmul.f32 %v3247_v20, %v3243_v63 }
 0x57d   :  { %2471 = vst.msk [vmem:[#allocation3 + $0x1] sm:$0x1] %vm2333_vm11, %v2470_v17 }
 0x57e   :  { %3259 = shalt.err (!%p3256_p4)
}
 0x57f   :  { %2481 = dma.vmem_to_hbm [thread:$0]  %s2479_s0, 32, %s4691_s7, [#allocation4]  }
 0x580   :  { %3268 = dma.done.wait [#allocation4], 32  }
 0x581   :  { %3269 = vsyncadd [#allocation4], 4294967264 }
 0x582   :  { %2485 = vsyncpa [#allocation4], 1 }

</bundles_post_ra>
